<compile_context>
chip_gen: v7x
topology: tpu7x:2x2x1
jax: 0.10.0
libtpu: 0.0.40
codegen_flags: <defaults>
</compile_context>

<pallas_src>
import functools
import math

import jax
import jax.numpy as jnp
from jax.experimental import pallas as pl
from jax.experimental.pallas import tpu as pltpu


# ---------------------------------------------------------------------------
# In-kernel helpers
# ---------------------------------------------------------------------------

def _torch_layernorm(x, a2, b2, eps):
    # Custom AoA LayerNorm: mean(-1), unbiased std(-1), eps added to std (not var).
    d = x.shape[-1]
    mean = jnp.mean(x, axis=-1, keepdims=True)
    diff = x - mean
    var_unbiased = jnp.sum(diff * diff, axis=-1, keepdims=True) * (1.0 / (d - 1))
    std = jnp.sqrt(var_unbiased)
    inv = pl.reciprocal(std + eps, approx=True)        # EUP, frees VALU slots
    return a2 * (diff * inv) + b2


# ---------------------------------------------------------------------------
# Fused kernel: full layer stack + final norm + projection
# ---------------------------------------------------------------------------

def aoa_core_kernel(x_ref,
                    wqkv_ref, bqkv_ref,
                    wtop_ref, wbot_ref, baoa_ref,
                    wo_ref, bo_ref,
                    lna_ref, lnb_ref,
                    lnaf_ref, lnbf_ref,
                    wrez_ref, brez_ref,
                    out_ref,
                    *, num_layers, num_heads, d_k, eps):
    BT, N, D = x_ref.shape
    M = BT * N

    # Fold batch into the matmul M dimension; activation stays resident (VMEM/vregs).
    x = x_ref[...].astype(jnp.float32).reshape(M, D)

    for layer in range(num_layers):                      # static, fully unrolled
        # ---- fused Q/K/V projection (scale already folded into the Q columns) ----
        qkv = jnp.dot(x, wqkv_ref[layer],
                      preferred_element_type=jnp.float32) + bqkv_ref[layer]   # (M, 3D)
        qkv3 = qkv.reshape(BT, N, 3 * D)

        # ---- AoA linear, "x" half of the concat (weight-split, no concat) ----
        z = jnp.dot(x, wbot_ref[layer],
                    preferred_element_type=jnp.float32) + baoa_ref[layer]     # (M, 2D)

        wtop = wtop_ref[layer]                           # (D, 2D)

        # ---- per-head scaled-dot attention (batch dim stays batched) ----
        for h in range(num_heads):                       # static, H small
            q_lo = h * d_k
            k_lo = D + h * d_k
            v_lo = 2 * D + h * d_k
            qh = qkv3[:, :, q_lo:q_lo + d_k]             # (BT, N, d_k)
            kh = qkv3[:, :, k_lo:k_lo + d_k]
            vh = qkv3[:, :, v_lo:v_lo + d_k]

            s = jnp.einsum('bqd,bkd->bqk', qh, kh,
                           preferred_element_type=jnp.float32)                # (BT, N, N)
            s = s - jnp.max(s, axis=-1, keepdims=True)   # numerically-stable softmax
            e = jnp.exp(s)
            p = e * pl.reciprocal(jnp.sum(e, axis=-1, keepdims=True), approx=True)

            oh = jnp.einsum('bqk,bkd->bqd', p, vh,
                            preferred_element_type=jnp.float32)               # (BT, N, d_k)

            # Fold this head's output straight into the AoA matmul (sublane-sliced
            # weight rows), instead of concatenating heads along the lane dim.
            z = z + jnp.dot(oh.reshape(M, d_k),
                            wtop[h * d_k:(h + 1) * d_k, :],
                            preferred_element_type=jnp.float32)

        # ---- GLU + output linear ----
        aoa = z[:, :D] * jax.nn.sigmoid(z[:, D:])                             # (M, D)
        att_out = jnp.dot(aoa, wo_ref[layer],
                          preferred_element_type=jnp.float32) + bo_ref[layer]

        # ---- residual: x + LayerNorm(att_out)   (dropout = identity in eval) ----
        x = x + _torch_layernorm(att_out, lna_ref[layer], lnb_ref[layer], eps)

    # ---- final LayerNorm + projection ----
    ln = _torch_layernorm(x, lnaf_ref[...], lnbf_ref[...], eps)
    y = jnp.dot(ln, wrez_ref[...], preferred_element_type=jnp.float32) + brez_ref[...]
    out_ref[...] = y.reshape(BT, N, y.shape[-1]).astype(out_ref.dtype)


# ---------------------------------------------------------------------------
# Wrapper (pallas_call plumbing)
# ---------------------------------------------------------------------------

def aoa_refiner_core(x, params, *, num_heads, eps=1e-6, batch_tile=None):
    """Full AoA_Refiner_Core forward in a single pallas_call."""
    B, N, D = x.shape
    assert D % num_heads == 0
    d_k = D // num_heads
    L = params["wqkv"].shape[0]
    E = params["w_rez"].shape[-1]

    # Default: maximal batch folding (one grid step).  For v7x-style megacore with
    # larger B, pass batch_tile = B // (2*k) so the "parallel" grid axis has
    # >= 2 balanced iterations to shard across TensorCores (weights stay resident
    # because their index_maps are grid-invariant).
    BT = B if batch_tile is None else batch_tile
    assert B % BT == 0
    grid = (B // BT,)

    weight_args = (params["wqkv"], params["bqkv"],
                   params["wtop"], params["wbot"], params["baoa"],
                   params["wo"], params["bo"],
                   params["lna"], params["lnb"],
                   params["lnaf"], params["lnbf"],
                   params["w_rez"], params["b_rez"])

    def full_spec(a):
        # Grid-invariant block: fetched once, kept resident in VMEM across steps.
        return pl.BlockSpec(a.shape, lambda i, _nd=a.ndim: (0,) * _nd)

    in_specs = [pl.BlockSpec((BT, N, D), lambda i: (i, 0, 0))]
    in_specs += [full_spec(w) for w in weight_args]

    kernel = functools.partial(aoa_core_kernel, num_layers=L,
                               num_heads=num_heads, d_k=d_k, eps=eps)

    # Advisory cost hint for XLA's scheduler around the custom call.
    M = B * N
    flops_per_layer = (2 * M * D * 3 * D            # fused QKV
                       + 2 * M * D * 2 * D          # AoA bottom (x half)
                       + 2 * M * D * 2 * D          # AoA top (attended half, all heads)
                       + 2 * B * num_heads * N * N * d_k * 2   # scores + p@v
                       + 2 * M * D * D)             # output linear
    flops = L * flops_per_layer + 2 * M * D * E
    transc = L * (B * num_heads * N * N + M * D) + M  # exp + sigmoid + rsqrt-ish
    bytes_accessed = (x.size + B * N * E) * 4 + sum(int(w.size) * 4 for w in weight_args)
    cost = pl.CostEstimate(flops=int(flops), transcendentals=int(transc),
                           bytes_accessed=int(bytes_accessed))

    # TODO(synk): at toy D=32/E=64 the output stores are lane-sparse (<128 lanes);
    # at production widths pad D/E to multiples of 128 for unmasked stores.
    return pl.pallas_call(
        kernel,
        out_shape=jax.ShapeDtypeStruct((B, N, E), x.dtype),
        grid=grid,
        in_specs=in_specs,
        out_specs=pl.BlockSpec((BT, N, E), lambda i: (i, 0, 0)),
        compiler_params=pltpu.CompilerParams(dimension_semantics=("parallel",)),
        cost_estimate=cost,
    )(x, *weight_args)


# ---------------------------------------------------------------------------
# Deterministic parameter construction (torch-equivalent shapes, pre-fused)
# ---------------------------------------------------------------------------

def make_params(key, *, stack_layers, features_size, embedding_size, num_heads):
    D, E = features_size, embedding_size
    d_k = D // num_heads
    inv_scale = 1.0 / math.sqrt(d_k)

    def linear(k, d_in, d_out):
        k1, k2 = jax.random.split(k)
        # stored already transposed to (in, out); bias stored as (1, out)
        w = jax.random.normal(k1, (d_in, d_out), jnp.float32) * 0.05
        b = jax.random.normal(k2, (1, d_out), jnp.float32) * 0.01
        return w, b

    wqkv_l, bqkv_l, wtop_l, wbot_l, baoa_l = [], [], [], [], []
    wo_l, bo_l, lna_l, lnb_l = [], [], [], []
    for _ in range(stack_layers):
        key, kq, kk, kv, ka, ko = jax.random.split(key, 6)
        wq, bq = linear(kq, D, D)
        wk, bk = linear(kk, D, D)
        wv, bv = linear(kv, D, D)
        waoa, baoa = linear(ka, 2 * D, 2 * D)
        wo, bo = linear(ko, D, D)

        # Fuse Q/K/V into one (D, 3D) matmul; fold 1/sqrt(d_k) into the Q part.
        wqkv_l.append(jnp.concatenate([wq * inv_scale, wk, wv], axis=1))
        bqkv_l.append(jnp.concatenate([bq * inv_scale, bk, bv], axis=1))
        # Split AoA weight: cat([attended, x]) @ W == attended @ W_top + x @ W_bot.
        wtop_l.append(waoa[:D, :])
        wbot_l.append(waoa[D:, :])
        baoa_l.append(baoa)
        wo_l.append(wo)
        bo_l.append(bo)
        lna_l.append(jnp.ones((1, D), jnp.float32))     # custom LayerNorm init
        lnb_l.append(jnp.zeros((1, D), jnp.float32))

    key, kr = jax.random.split(key)
    w_rez, b_rez = linear(kr, D, E)

    return {
        "wqkv": jnp.stack(wqkv_l), "bqkv": jnp.stack(bqkv_l),
        "wtop": jnp.stack(wtop_l), "wbot": jnp.stack(wbot_l),
        "baoa": jnp.stack(baoa_l),
        "wo": jnp.stack(wo_l), "bo": jnp.stack(bo_l),
        "lna": jnp.stack(lna_l), "lnb": jnp.stack(lnb_l),
        "lnaf": jnp.ones((1, D), jnp.float32),
        "lnbf": jnp.zeros((1, D), jnp.float32),
        "w_rez": w_rez, "b_rez": b_rez,
    }


# ---------------------------------------------------------------------------
# Main
# ---------------------------------------------------------------------------

if __name__ == "__main__":
    # batch=2, seq=8, features_size=32, num_heads=4, stack_layers=2, embedding=64
    B, N, D, H, L, E = 2, 8, 32, 4, 2, 64

    key = jax.random.PRNGKey(0)
    key, kx, kp = jax.random.split(key, 3)
    x = jax.random.normal(kx, (B, N, D), jnp.float32)
    params = make_params(kp, stack_layers=L, features_size=D,
                         embedding_size=E, num_heads=H)

    out = aoa_refiner_core(x, params, num_heads=H)
    out = jax.block_until_ready(out)
    assert out.shape == (B, N, E), out.shape
    print("KERNEL_OK")
</pallas_src>

<mosaic_0001>
module attributes {stable_mosaic.version = 11 : i64} {
  func.func @aoa_core_kernel(%arg0: i32, %arg1: memref<2x8x32xf32, #tpu.memory_space<vmem>>, %arg2: memref<2x32x96xf32, #tpu.memory_space<vmem>>, %arg3: memref<2x1x96xf32, #tpu.memory_space<vmem>>, %arg4: memref<2x32x64xf32, #tpu.memory_space<vmem>>, %arg5: memref<2x32x64xf32, #tpu.memory_space<vmem>>, %arg6: memref<2x1x64xf32, #tpu.memory_space<vmem>>, %arg7: memref<2x32x32xf32, #tpu.memory_space<vmem>>, %arg8: memref<2x1x32xf32, #tpu.memory_space<vmem>>, %arg9: memref<2x1x32xf32, #tpu.memory_space<vmem>>, %arg10: memref<2x1x32xf32, #tpu.memory_space<vmem>>, %arg11: memref<1x32xf32, #tpu.memory_space<vmem>>, %arg12: memref<1x32xf32, #tpu.memory_space<vmem>>, %arg13: memref<32x64xf32, #tpu.memory_space<vmem>>, %arg14: memref<1x64xf32, #tpu.memory_space<vmem>>, %arg15: memref<2x8x64xf32, #tpu.memory_space<vmem>>) attributes {dimension_semantics = [#tpu.dimension_semantics<parallel>], iteration_bounds = array<i64: 1>, scalar_prefetch = 0 : i64, scratch_operands = 0 : i64, tpu.core_type = #tpu.core_type<tc>, window_params = [{transform_indices = @transform_0, window_bounds = array<i64: 2, 8, 32>}, {pipeline_mode = #tpu.pipeline_mode<synchronous>, transform_indices = @transform_1, window_bounds = array<i64: 2, 32, 96>}, {pipeline_mode = #tpu.pipeline_mode<synchronous>, transform_indices = @transform_2, window_bounds = array<i64: 2, 1, 96>}, {pipeline_mode = #tpu.pipeline_mode<synchronous>, transform_indices = @transform_3, window_bounds = array<i64: 2, 32, 64>}, {pipeline_mode = #tpu.pipeline_mode<synchronous>, transform_indices = @transform_4, window_bounds = array<i64: 2, 32, 64>}, {pipeline_mode = #tpu.pipeline_mode<synchronous>, transform_indices = @transform_5, window_bounds = array<i64: 2, 1, 64>}, {pipeline_mode = #tpu.pipeline_mode<synchronous>, transform_indices = @transform_6, window_bounds = array<i64: 2, 32, 32>}, {pipeline_mode = #tpu.pipeline_mode<synchronous>, transform_indices = @transform_7, window_bounds = array<i64: 2, 1, 32>}, {pipeline_mode = #tpu.pipeline_mode<synchronous>, transform_indices = @transform_8, window_bounds = array<i64: 2, 1, 32>}, {pipeline_mode = #tpu.pipeline_mode<synchronous>, transform_indices = @transform_9, window_bounds = array<i64: 2, 1, 32>}, {pipeline_mode = #tpu.pipeline_mode<synchronous>, transform_indices = @transform_10, window_bounds = array<i64: 1, 32>}, {pipeline_mode = #tpu.pipeline_mode<synchronous>, transform_indices = @transform_11, window_bounds = array<i64: 1, 32>}, {pipeline_mode = #tpu.pipeline_mode<synchronous>, transform_indices = @transform_12, window_bounds = array<i64: 32, 64>}, {pipeline_mode = #tpu.pipeline_mode<synchronous>, transform_indices = @transform_13, window_bounds = array<i64: 1, 64>}, {transform_indices = @transform_14, window_bounds = array<i64: 2, 8, 64>}]} {
    %c0 = arith.constant 0 : index
    %c0_0 = arith.constant 0 : index
    %c0_1 = arith.constant 0 : index
    %0 = vector.load %arg1[%c0, %c0_0, %c0_1] : memref<2x8x32xf32, #tpu.memory_space<vmem>>, vector<2x8x32xf32>
    %1 = vector.shape_cast %0 : vector<2x8x32xf32> to vector<16x32xf32>
    %c0_2 = arith.constant 0 : index
    %c0_3 = arith.constant 0 : index
    %c0_4 = arith.constant 0 : index
    %2 = vector.load %arg2[%c0_2, %c0_3, %c0_4] : memref<2x32x96xf32, #tpu.memory_space<vmem>>, vector<1x32x96xf32>
    %3 = vector.shape_cast %2 : vector<1x32x96xf32> to vector<32x96xf32>
    %cst = arith.constant dense<0.000000e+00> : vector<16x96xf32>
    %4 = tpu.matmul %1, %3, %cst {dimension_numbers = #tpu.dot_dimension_numbers<[1], [0], [0], [1], [0, 0, 1, 1], [], []>} : vector<16x32xf32>, vector<32x96xf32>, vector<16x96xf32> -> vector<16x96xf32>
    %c0_5 = arith.constant 0 : index
    %c0_6 = arith.constant 0 : index
    %c0_7 = arith.constant 0 : index
    %5 = vector.load %arg3[%c0_5, %c0_6, %c0_7] : memref<2x1x96xf32, #tpu.memory_space<vmem>>, vector<1x1x96xf32>
    %6 = vector.shape_cast %5 : vector<1x1x96xf32> to vector<1x96xf32>
    %7 = vector.broadcast %6 : vector<1x96xf32> to vector<16x96xf32>
    %8 = arith.addf %4, %7 : vector<16x96xf32>
    %9 = vector.shape_cast %8 : vector<16x96xf32> to vector<2x8x96xf32>
    %c0_8 = arith.constant 0 : index
    %c0_9 = arith.constant 0 : index
    %c0_10 = arith.constant 0 : index
    %10 = vector.load %arg5[%c0_8, %c0_9, %c0_10] : memref<2x32x64xf32, #tpu.memory_space<vmem>>, vector<1x32x64xf32>
    %11 = vector.shape_cast %10 : vector<1x32x64xf32> to vector<32x64xf32>
    %cst_11 = arith.constant dense<0.000000e+00> : vector<16x64xf32>
    %12 = tpu.matmul %1, %11, %cst_11 {dimension_numbers = #tpu.dot_dimension_numbers<[1], [0], [0], [1], [0, 0, 1, 1], [], []>} : vector<16x32xf32>, vector<32x64xf32>, vector<16x64xf32> -> vector<16x64xf32>
    %c0_12 = arith.constant 0 : index
    %c0_13 = arith.constant 0 : index
    %c0_14 = arith.constant 0 : index
    %13 = vector.load %arg6[%c0_12, %c0_13, %c0_14] : memref<2x1x64xf32, #tpu.memory_space<vmem>>, vector<1x1x64xf32>
    %14 = vector.shape_cast %13 : vector<1x1x64xf32> to vector<1x64xf32>
    %15 = vector.broadcast %14 : vector<1x64xf32> to vector<16x64xf32>
    %16 = arith.addf %12, %15 : vector<16x64xf32>
    %c0_15 = arith.constant 0 : index
    %c0_16 = arith.constant 0 : index
    %c0_17 = arith.constant 0 : index
    %17 = vector.load %arg4[%c0_15, %c0_16, %c0_17] : memref<2x32x64xf32, #tpu.memory_space<vmem>>, vector<1x32x64xf32>
    %18 = vector.shape_cast %17 : vector<1x32x64xf32> to vector<32x64xf32>
    %19 = vector.extract_strided_slice %9 {offsets = [0, 0, 0], sizes = [2, 8, 8], strides = [1, 1, 1]} : vector<2x8x96xf32> to vector<2x8x8xf32>
    %20 = vector.extract_strided_slice %9 {offsets = [0, 0, 32], sizes = [2, 8, 8], strides = [1, 1, 1]} : vector<2x8x96xf32> to vector<2x8x8xf32>
    %21 = vector.extract_strided_slice %9 {offsets = [0, 0, 64], sizes = [2, 8, 8], strides = [1, 1, 1]} : vector<2x8x96xf32> to vector<2x8x8xf32>
    "tpu.trace_start"() <{level = 10 : i32, message = "bqd,bkd->bqk"}> : () -> ()
    %cst_18 = arith.constant dense<0.000000e+00> : vector<2x8x8xf32>
    %22 = tpu.matmul %19, %20, %cst_18 {dimension_numbers = #tpu.dot_dimension_numbers<[2], [2], [1], [1], [0, 0, 0, 1, 1, 1], [0], [0]>} : vector<2x8x8xf32>, vector<2x8x8xf32>, vector<2x8x8xf32> -> vector<2x8x8xf32>
    "tpu.trace_stop"() : () -> ()
    %cst_19 = arith.constant dense<0xFF800000> : vector<2x8xf32>
    %23 = vector.multi_reduction <maximumf>, %22, %cst_19 [2] : vector<2x8x8xf32> to vector<2x8xf32>
    %24 = vector.shape_cast %23 : vector<2x8xf32> to vector<2x8x1xf32>
    %25 = vector.broadcast %24 : vector<2x8x1xf32> to vector<2x8x8xf32>
    %26 = arith.subf %22, %25 : vector<2x8x8xf32>
    %27 = math.exp %26 : vector<2x8x8xf32>
    %cst_20 = arith.constant dense<0.000000e+00> : vector<2x8xf32>
    %28 = vector.multi_reduction <add>, %27, %cst_20 [2] : vector<2x8x8xf32> to vector<2x8xf32>
    %29 = vector.shape_cast %28 : vector<2x8xf32> to vector<2x8x1xf32>
    %30 = tpu.reciprocal %29 {approx = true} : vector<2x8x1xf32> -> vector<2x8x1xf32>
    %31 = vector.broadcast %30 : vector<2x8x1xf32> to vector<2x8x8xf32>
    %32 = arith.mulf %27, %31 : vector<2x8x8xf32>
    "tpu.trace_start"() <{level = 10 : i32, message = "bqk,bkd->bqd"}> : () -> ()
    %cst_21 = arith.constant dense<0.000000e+00> : vector<2x8x8xf32>
    %33 = tpu.matmul %32, %21, %cst_21 {dimension_numbers = #tpu.dot_dimension_numbers<[2], [1], [1], [2], [0, 0, 0, 1, 1, 2], [0], [0]>} : vector<2x8x8xf32>, vector<2x8x8xf32>, vector<2x8x8xf32> -> vector<2x8x8xf32>
    "tpu.trace_stop"() : () -> ()
    %34 = vector.shape_cast %33 : vector<2x8x8xf32> to vector<16x8xf32>
    %35 = vector.extract_strided_slice %18 {offsets = [0, 0], sizes = [8, 64], strides = [1, 1]} : vector<32x64xf32> to vector<8x64xf32>
    %cst_22 = arith.constant dense<0.000000e+00> : vector<16x64xf32>
    %36 = tpu.matmul %34, %35, %cst_22 {dimension_numbers = #tpu.dot_dimension_numbers<[1], [0], [0], [1], [0, 0, 1, 1], [], []>} : vector<16x8xf32>, vector<8x64xf32>, vector<16x64xf32> -> vector<16x64xf32>
    %37 = arith.addf %16, %36 : vector<16x64xf32>
    %38 = vector.extract_strided_slice %9 {offsets = [0, 0, 8], sizes = [2, 8, 8], strides = [1, 1, 1]} : vector<2x8x96xf32> to vector<2x8x8xf32>
    %39 = vector.extract_strided_slice %9 {offsets = [0, 0, 40], sizes = [2, 8, 8], strides = [1, 1, 1]} : vector<2x8x96xf32> to vector<2x8x8xf32>
    %40 = vector.extract_strided_slice %9 {offsets = [0, 0, 72], sizes = [2, 8, 8], strides = [1, 1, 1]} : vector<2x8x96xf32> to vector<2x8x8xf32>
    "tpu.trace_start"() <{level = 10 : i32, message = "bqd,bkd->bqk"}> : () -> ()
    %cst_23 = arith.constant dense<0.000000e+00> : vector<2x8x8xf32>
    %41 = tpu.matmul %38, %39, %cst_23 {dimension_numbers = #tpu.dot_dimension_numbers<[2], [2], [1], [1], [0, 0, 0, 1, 1, 1], [0], [0]>} : vector<2x8x8xf32>, vector<2x8x8xf32>, vector<2x8x8xf32> -> vector<2x8x8xf32>
    "tpu.trace_stop"() : () -> ()
    %cst_24 = arith.constant dense<0xFF800000> : vector<2x8xf32>
    %42 = vector.multi_reduction <maximumf>, %41, %cst_24 [2] : vector<2x8x8xf32> to vector<2x8xf32>
    %43 = vector.shape_cast %42 : vector<2x8xf32> to vector<2x8x1xf32>
    %44 = vector.broadcast %43 : vector<2x8x1xf32> to vector<2x8x8xf32>
    %45 = arith.subf %41, %44 : vector<2x8x8xf32>
    %46 = math.exp %45 : vector<2x8x8xf32>
    %cst_25 = arith.constant dense<0.000000e+00> : vector<2x8xf32>
    %47 = vector.multi_reduction <add>, %46, %cst_25 [2] : vector<2x8x8xf32> to vector<2x8xf32>
    %48 = vector.shape_cast %47 : vector<2x8xf32> to vector<2x8x1xf32>
    %49 = tpu.reciprocal %48 {approx = true} : vector<2x8x1xf32> -> vector<2x8x1xf32>
    %50 = vector.broadcast %49 : vector<2x8x1xf32> to vector<2x8x8xf32>
    %51 = arith.mulf %46, %50 : vector<2x8x8xf32>
    "tpu.trace_start"() <{level = 10 : i32, message = "bqk,bkd->bqd"}> : () -> ()
    %cst_26 = arith.constant dense<0.000000e+00> : vector<2x8x8xf32>
    %52 = tpu.matmul %51, %40, %cst_26 {dimension_numbers = #tpu.dot_dimension_numbers<[2], [1], [1], [2], [0, 0, 0, 1, 1, 2], [0], [0]>} : vector<2x8x8xf32>, vector<2x8x8xf32>, vector<2x8x8xf32> -> vector<2x8x8xf32>
    "tpu.trace_stop"() : () -> ()
    %53 = vector.shape_cast %52 : vector<2x8x8xf32> to vector<16x8xf32>
    %54 = vector.extract_strided_slice %18 {offsets = [8, 0], sizes = [8, 64], strides = [1, 1]} : vector<32x64xf32> to vector<8x64xf32>
    %cst_27 = arith.constant dense<0.000000e+00> : vector<16x64xf32>
    %55 = tpu.matmul %53, %54, %cst_27 {dimension_numbers = #tpu.dot_dimension_numbers<[1], [0], [0], [1], [0, 0, 1, 1], [], []>} : vector<16x8xf32>, vector<8x64xf32>, vector<16x64xf32> -> vector<16x64xf32>
    %56 = arith.addf %37, %55 : vector<16x64xf32>
    %57 = vector.extract_strided_slice %9 {offsets = [0, 0, 16], sizes = [2, 8, 8], strides = [1, 1, 1]} : vector<2x8x96xf32> to vector<2x8x8xf32>
    %58 = vector.extract_strided_slice %9 {offsets = [0, 0, 48], sizes = [2, 8, 8], strides = [1, 1, 1]} : vector<2x8x96xf32> to vector<2x8x8xf32>
    %59 = vector.extract_strided_slice %9 {offsets = [0, 0, 80], sizes = [2, 8, 8], strides = [1, 1, 1]} : vector<2x8x96xf32> to vector<2x8x8xf32>
    "tpu.trace_start"() <{level = 10 : i32, message = "bqd,bkd->bqk"}> : () -> ()
    %cst_28 = arith.constant dense<0.000000e+00> : vector<2x8x8xf32>
    %60 = tpu.matmul %57, %58, %cst_28 {dimension_numbers = #tpu.dot_dimension_numbers<[2], [2], [1], [1], [0, 0, 0, 1, 1, 1], [0], [0]>} : vector<2x8x8xf32>, vector<2x8x8xf32>, vector<2x8x8xf32> -> vector<2x8x8xf32>
    "tpu.trace_stop"() : () -> ()
    %cst_29 = arith.constant dense<0xFF800000> : vector<2x8xf32>
    %61 = vector.multi_reduction <maximumf>, %60, %cst_29 [2] : vector<2x8x8xf32> to vector<2x8xf32>
    %62 = vector.shape_cast %61 : vector<2x8xf32> to vector<2x8x1xf32>
    %63 = vector.broadcast %62 : vector<2x8x1xf32> to vector<2x8x8xf32>
    %64 = arith.subf %60, %63 : vector<2x8x8xf32>
    %65 = math.exp %64 : vector<2x8x8xf32>
    %cst_30 = arith.constant dense<0.000000e+00> : vector<2x8xf32>
    %66 = vector.multi_reduction <add>, %65, %cst_30 [2] : vector<2x8x8xf32> to vector<2x8xf32>
    %67 = vector.shape_cast %66 : vector<2x8xf32> to vector<2x8x1xf32>
    %68 = tpu.reciprocal %67 {approx = true} : vector<2x8x1xf32> -> vector<2x8x1xf32>
    %69 = vector.broadcast %68 : vector<2x8x1xf32> to vector<2x8x8xf32>
    %70 = arith.mulf %65, %69 : vector<2x8x8xf32>
    "tpu.trace_start"() <{level = 10 : i32, message = "bqk,bkd->bqd"}> : () -> ()
    %cst_31 = arith.constant dense<0.000000e+00> : vector<2x8x8xf32>
    %71 = tpu.matmul %70, %59, %cst_31 {dimension_numbers = #tpu.dot_dimension_numbers<[2], [1], [1], [2], [0, 0, 0, 1, 1, 2], [0], [0]>} : vector<2x8x8xf32>, vector<2x8x8xf32>, vector<2x8x8xf32> -> vector<2x8x8xf32>
    "tpu.trace_stop"() : () -> ()
    %72 = vector.shape_cast %71 : vector<2x8x8xf32> to vector<16x8xf32>
    %73 = vector.extract_strided_slice %18 {offsets = [16, 0], sizes = [8, 64], strides = [1, 1]} : vector<32x64xf32> to vector<8x64xf32>
    %cst_32 = arith.constant dense<0.000000e+00> : vector<16x64xf32>
    %74 = tpu.matmul %72, %73, %cst_32 {dimension_numbers = #tpu.dot_dimension_numbers<[1], [0], [0], [1], [0, 0, 1, 1], [], []>} : vector<16x8xf32>, vector<8x64xf32>, vector<16x64xf32> -> vector<16x64xf32>
    %75 = arith.addf %56, %74 : vector<16x64xf32>
    %76 = vector.extract_strided_slice %9 {offsets = [0, 0, 24], sizes = [2, 8, 8], strides = [1, 1, 1]} : vector<2x8x96xf32> to vector<2x8x8xf32>
    %77 = vector.extract_strided_slice %9 {offsets = [0, 0, 56], sizes = [2, 8, 8], strides = [1, 1, 1]} : vector<2x8x96xf32> to vector<2x8x8xf32>
    %78 = vector.extract_strided_slice %9 {offsets = [0, 0, 88], sizes = [2, 8, 8], strides = [1, 1, 1]} : vector<2x8x96xf32> to vector<2x8x8xf32>
    "tpu.trace_start"() <{level = 10 : i32, message = "bqd,bkd->bqk"}> : () -> ()
    %cst_33 = arith.constant dense<0.000000e+00> : vector<2x8x8xf32>
    %79 = tpu.matmul %76, %77, %cst_33 {dimension_numbers = #tpu.dot_dimension_numbers<[2], [2], [1], [1], [0, 0, 0, 1, 1, 1], [0], [0]>} : vector<2x8x8xf32>, vector<2x8x8xf32>, vector<2x8x8xf32> -> vector<2x8x8xf32>
    "tpu.trace_stop"() : () -> ()
    %cst_34 = arith.constant dense<0xFF800000> : vector<2x8xf32>
    %80 = vector.multi_reduction <maximumf>, %79, %cst_34 [2] : vector<2x8x8xf32> to vector<2x8xf32>
    %81 = vector.shape_cast %80 : vector<2x8xf32> to vector<2x8x1xf32>
    %82 = vector.broadcast %81 : vector<2x8x1xf32> to vector<2x8x8xf32>
    %83 = arith.subf %79, %82 : vector<2x8x8xf32>
    %84 = math.exp %83 : vector<2x8x8xf32>
    %cst_35 = arith.constant dense<0.000000e+00> : vector<2x8xf32>
    %85 = vector.multi_reduction <add>, %84, %cst_35 [2] : vector<2x8x8xf32> to vector<2x8xf32>
    %86 = vector.shape_cast %85 : vector<2x8xf32> to vector<2x8x1xf32>
    %87 = tpu.reciprocal %86 {approx = true} : vector<2x8x1xf32> -> vector<2x8x1xf32>
    %88 = vector.broadcast %87 : vector<2x8x1xf32> to vector<2x8x8xf32>
    %89 = arith.mulf %84, %88 : vector<2x8x8xf32>
    "tpu.trace_start"() <{level = 10 : i32, message = "bqk,bkd->bqd"}> : () -> ()
    %cst_36 = arith.constant dense<0.000000e+00> : vector<2x8x8xf32>
    %90 = tpu.matmul %89, %78, %cst_36 {dimension_numbers = #tpu.dot_dimension_numbers<[2], [1], [1], [2], [0, 0, 0, 1, 1, 2], [0], [0]>} : vector<2x8x8xf32>, vector<2x8x8xf32>, vector<2x8x8xf32> -> vector<2x8x8xf32>
    "tpu.trace_stop"() : () -> ()
    %91 = vector.shape_cast %90 : vector<2x8x8xf32> to vector<16x8xf32>
    %92 = vector.extract_strided_slice %18 {offsets = [24, 0], sizes = [8, 64], strides = [1, 1]} : vector<32x64xf32> to vector<8x64xf32>
    %cst_37 = arith.constant dense<0.000000e+00> : vector<16x64xf32>
    %93 = tpu.matmul %91, %92, %cst_37 {dimension_numbers = #tpu.dot_dimension_numbers<[1], [0], [0], [1], [0, 0, 1, 1], [], []>} : vector<16x8xf32>, vector<8x64xf32>, vector<16x64xf32> -> vector<16x64xf32>
    %94 = arith.addf %75, %93 : vector<16x64xf32>
    %95 = vector.extract_strided_slice %94 {offsets = [0, 0], sizes = [16, 32], strides = [1, 1]} : vector<16x64xf32> to vector<16x32xf32>
    %96 = vector.extract_strided_slice %94 {offsets = [0, 32], sizes = [16, 32], strides = [1, 1]} : vector<16x64xf32> to vector<16x32xf32>
    %97 = arith.negf %96 : vector<16x32xf32>
    %98 = math.exp %97 : vector<16x32xf32>
    %cst_38 = arith.constant 1.000000e+00 : f32
    %99 = vector.broadcast %cst_38 : f32 to vector<16x32xf32>
    %100 = arith.addf %99, %98 : vector<16x32xf32>
    %101 = arith.divf %99, %100 : vector<16x32xf32>
    %102 = arith.mulf %95, %101 : vector<16x32xf32>
    %c0_39 = arith.constant 0 : index
    %c0_40 = arith.constant 0 : index
    %c0_41 = arith.constant 0 : index
    %103 = vector.load %arg7[%c0_39, %c0_40, %c0_41] : memref<2x32x32xf32, #tpu.memory_space<vmem>>, vector<1x32x32xf32>
    %104 = vector.shape_cast %103 : vector<1x32x32xf32> to vector<32x32xf32>
    %cst_42 = arith.constant dense<0.000000e+00> : vector<16x32xf32>
    %105 = tpu.matmul %102, %104, %cst_42 {dimension_numbers = #tpu.dot_dimension_numbers<[1], [0], [0], [1], [0, 0, 1, 1], [], []>} : vector<16x32xf32>, vector<32x32xf32>, vector<16x32xf32> -> vector<16x32xf32>
    %c0_43 = arith.constant 0 : index
    %c0_44 = arith.constant 0 : index
    %c0_45 = arith.constant 0 : index
    %106 = vector.load %arg8[%c0_43, %c0_44, %c0_45] : memref<2x1x32xf32, #tpu.memory_space<vmem>>, vector<1x1x32xf32>
    %107 = vector.shape_cast %106 : vector<1x1x32xf32> to vector<1x32xf32>
    %108 = vector.broadcast %107 : vector<1x32xf32> to vector<16x32xf32>
    %109 = arith.addf %105, %108 : vector<16x32xf32>
    %c0_46 = arith.constant 0 : index
    %c0_47 = arith.constant 0 : index
    %c0_48 = arith.constant 0 : index
    %110 = vector.load %arg9[%c0_46, %c0_47, %c0_48] : memref<2x1x32xf32, #tpu.memory_space<vmem>>, vector<1x1x32xf32>
    %111 = vector.shape_cast %110 : vector<1x1x32xf32> to vector<1x32xf32>
    %c0_49 = arith.constant 0 : index
    %c0_50 = arith.constant 0 : index
    %c0_51 = arith.constant 0 : index
    %112 = vector.load %arg10[%c0_49, %c0_50, %c0_51] : memref<2x1x32xf32, #tpu.memory_space<vmem>>, vector<1x1x32xf32>
    %113 = vector.shape_cast %112 : vector<1x1x32xf32> to vector<1x32xf32>
    %cst_52 = arith.constant dense<0.000000e+00> : vector<16xf32>
    %114 = vector.multi_reduction <add>, %109, %cst_52 [1] : vector<16x32xf32> to vector<16xf32>
    %115 = vector.shape_cast %114 : vector<16xf32> to vector<16x1xf32>
    %cst_53 = arith.constant 3.200000e+01 : f32
    %116 = vector.broadcast %cst_53 : f32 to vector<16x1xf32>
    %117 = arith.divf %115, %116 : vector<16x1xf32>
    %118 = vector.broadcast %117 : vector<16x1xf32> to vector<16x32xf32>
    %119 = arith.subf %109, %118 : vector<16x32xf32>
    %120 = arith.mulf %119, %119 : vector<16x32xf32>
    %cst_54 = arith.constant dense<0.000000e+00> : vector<16xf32>
    %121 = vector.multi_reduction <add>, %120, %cst_54 [1] : vector<16x32xf32> to vector<16xf32>
    %122 = vector.shape_cast %121 : vector<16xf32> to vector<16x1xf32>
    %cst_55 = arith.constant 0.0322580636 : f32
    %123 = vector.broadcast %cst_55 : f32 to vector<16x1xf32>
    %124 = arith.mulf %122, %123 : vector<16x1xf32>
    %125 = math.sqrt %124 : vector<16x1xf32>
    %cst_56 = arith.constant 9.99999997E-7 : f32
    %126 = vector.broadcast %cst_56 : f32 to vector<16x1xf32>
    %127 = arith.addf %125, %126 : vector<16x1xf32>
    %128 = tpu.reciprocal %127 {approx = true} : vector<16x1xf32> -> vector<16x1xf32>
    %129 = vector.broadcast %128 : vector<16x1xf32> to vector<16x32xf32>
    %130 = arith.mulf %119, %129 : vector<16x32xf32>
    %131 = vector.broadcast %111 : vector<1x32xf32> to vector<16x32xf32>
    %132 = arith.mulf %131, %130 : vector<16x32xf32>
    %133 = vector.broadcast %113 : vector<1x32xf32> to vector<16x32xf32>
    %134 = arith.addf %132, %133 : vector<16x32xf32>
    %135 = arith.addf %1, %134 : vector<16x32xf32>
    %c1 = arith.constant 1 : index
    %c0_57 = arith.constant 0 : index
    %c0_58 = arith.constant 0 : index
    %136 = vector.load %arg2[%c1, %c0_57, %c0_58] : memref<2x32x96xf32, #tpu.memory_space<vmem>>, vector<1x32x96xf32>
    %137 = vector.shape_cast %136 : vector<1x32x96xf32> to vector<32x96xf32>
    %cst_59 = arith.constant dense<0.000000e+00> : vector<16x96xf32>
    %138 = tpu.matmul %135, %137, %cst_59 {dimension_numbers = #tpu.dot_dimension_numbers<[1], [0], [0], [1], [0, 0, 1, 1], [], []>} : vector<16x32xf32>, vector<32x96xf32>, vector<16x96xf32> -> vector<16x96xf32>
    %c1_60 = arith.constant 1 : index
    %c0_61 = arith.constant 0 : index
    %c0_62 = arith.constant 0 : index
    %139 = vector.load %arg3[%c1_60, %c0_61, %c0_62] : memref<2x1x96xf32, #tpu.memory_space<vmem>>, vector<1x1x96xf32>
    %140 = vector.shape_cast %139 : vector<1x1x96xf32> to vector<1x96xf32>
    %141 = vector.broadcast %140 : vector<1x96xf32> to vector<16x96xf32>
    %142 = arith.addf %138, %141 : vector<16x96xf32>
    %143 = vector.shape_cast %142 : vector<16x96xf32> to vector<2x8x96xf32>
    %c1_63 = arith.constant 1 : index
    %c0_64 = arith.constant 0 : index
    %c0_65 = arith.constant 0 : index
    %144 = vector.load %arg5[%c1_63, %c0_64, %c0_65] : memref<2x32x64xf32, #tpu.memory_space<vmem>>, vector<1x32x64xf32>
    %145 = vector.shape_cast %144 : vector<1x32x64xf32> to vector<32x64xf32>
    %cst_66 = arith.constant dense<0.000000e+00> : vector<16x64xf32>
    %146 = tpu.matmul %135, %145, %cst_66 {dimension_numbers = #tpu.dot_dimension_numbers<[1], [0], [0], [1], [0, 0, 1, 1], [], []>} : vector<16x32xf32>, vector<32x64xf32>, vector<16x64xf32> -> vector<16x64xf32>
    %c1_67 = arith.constant 1 : index
    %c0_68 = arith.constant 0 : index
    %c0_69 = arith.constant 0 : index
    %147 = vector.load %arg6[%c1_67, %c0_68, %c0_69] : memref<2x1x64xf32, #tpu.memory_space<vmem>>, vector<1x1x64xf32>
    %148 = vector.shape_cast %147 : vector<1x1x64xf32> to vector<1x64xf32>
    %149 = vector.broadcast %148 : vector<1x64xf32> to vector<16x64xf32>
    %150 = arith.addf %146, %149 : vector<16x64xf32>
    %c1_70 = arith.constant 1 : index
    %c0_71 = arith.constant 0 : index
    %c0_72 = arith.constant 0 : index
    %151 = vector.load %arg4[%c1_70, %c0_71, %c0_72] : memref<2x32x64xf32, #tpu.memory_space<vmem>>, vector<1x32x64xf32>
    %152 = vector.shape_cast %151 : vector<1x32x64xf32> to vector<32x64xf32>
    %153 = vector.extract_strided_slice %143 {offsets = [0, 0, 0], sizes = [2, 8, 8], strides = [1, 1, 1]} : vector<2x8x96xf32> to vector<2x8x8xf32>
    %154 = vector.extract_strided_slice %143 {offsets = [0, 0, 32], sizes = [2, 8, 8], strides = [1, 1, 1]} : vector<2x8x96xf32> to vector<2x8x8xf32>
    %155 = vector.extract_strided_slice %143 {offsets = [0, 0, 64], sizes = [2, 8, 8], strides = [1, 1, 1]} : vector<2x8x96xf32> to vector<2x8x8xf32>
    "tpu.trace_start"() <{level = 10 : i32, message = "bqd,bkd->bqk"}> : () -> ()
    %cst_73 = arith.constant dense<0.000000e+00> : vector<2x8x8xf32>
    %156 = tpu.matmul %153, %154, %cst_73 {dimension_numbers = #tpu.dot_dimension_numbers<[2], [2], [1], [1], [0, 0, 0, 1, 1, 1], [0], [0]>} : vector<2x8x8xf32>, vector<2x8x8xf32>, vector<2x8x8xf32> -> vector<2x8x8xf32>
    "tpu.trace_stop"() : () -> ()
    %cst_74 = arith.constant dense<0xFF800000> : vector<2x8xf32>
    %157 = vector.multi_reduction <maximumf>, %156, %cst_74 [2] : vector<2x8x8xf32> to vector<2x8xf32>
    %158 = vector.shape_cast %157 : vector<2x8xf32> to vector<2x8x1xf32>
    %159 = vector.broadcast %158 : vector<2x8x1xf32> to vector<2x8x8xf32>
    %160 = arith.subf %156, %159 : vector<2x8x8xf32>
    %161 = math.exp %160 : vector<2x8x8xf32>
    %cst_75 = arith.constant dense<0.000000e+00> : vector<2x8xf32>
    %162 = vector.multi_reduction <add>, %161, %cst_75 [2] : vector<2x8x8xf32> to vector<2x8xf32>
    %163 = vector.shape_cast %162 : vector<2x8xf32> to vector<2x8x1xf32>
    %164 = tpu.reciprocal %163 {approx = true} : vector<2x8x1xf32> -> vector<2x8x1xf32>
    %165 = vector.broadcast %164 : vector<2x8x1xf32> to vector<2x8x8xf32>
    %166 = arith.mulf %161, %165 : vector<2x8x8xf32>
    "tpu.trace_start"() <{level = 10 : i32, message = "bqk,bkd->bqd"}> : () -> ()
    %cst_76 = arith.constant dense<0.000000e+00> : vector<2x8x8xf32>
    %167 = tpu.matmul %166, %155, %cst_76 {dimension_numbers = #tpu.dot_dimension_numbers<[2], [1], [1], [2], [0, 0, 0, 1, 1, 2], [0], [0]>} : vector<2x8x8xf32>, vector<2x8x8xf32>, vector<2x8x8xf32> -> vector<2x8x8xf32>
    "tpu.trace_stop"() : () -> ()
    %168 = vector.shape_cast %167 : vector<2x8x8xf32> to vector<16x8xf32>
    %169 = vector.extract_strided_slice %152 {offsets = [0, 0], sizes = [8, 64], strides = [1, 1]} : vector<32x64xf32> to vector<8x64xf32>
    %cst_77 = arith.constant dense<0.000000e+00> : vector<16x64xf32>
    %170 = tpu.matmul %168, %169, %cst_77 {dimension_numbers = #tpu.dot_dimension_numbers<[1], [0], [0], [1], [0, 0, 1, 1], [], []>} : vector<16x8xf32>, vector<8x64xf32>, vector<16x64xf32> -> vector<16x64xf32>
    %171 = arith.addf %150, %170 : vector<16x64xf32>
    %172 = vector.extract_strided_slice %143 {offsets = [0, 0, 8], sizes = [2, 8, 8], strides = [1, 1, 1]} : vector<2x8x96xf32> to vector<2x8x8xf32>
    %173 = vector.extract_strided_slice %143 {offsets = [0, 0, 40], sizes = [2, 8, 8], strides = [1, 1, 1]} : vector<2x8x96xf32> to vector<2x8x8xf32>
    %174 = vector.extract_strided_slice %143 {offsets = [0, 0, 72], sizes = [2, 8, 8], strides = [1, 1, 1]} : vector<2x8x96xf32> to vector<2x8x8xf32>
    "tpu.trace_start"() <{level = 10 : i32, message = "bqd,bkd->bqk"}> : () -> ()
    %cst_78 = arith.constant dense<0.000000e+00> : vector<2x8x8xf32>
    %175 = tpu.matmul %172, %173, %cst_78 {dimension_numbers = #tpu.dot_dimension_numbers<[2], [2], [1], [1], [0, 0, 0, 1, 1, 1], [0], [0]>} : vector<2x8x8xf32>, vector<2x8x8xf32>, vector<2x8x8xf32> -> vector<2x8x8xf32>
    "tpu.trace_stop"() : () -> ()
    %cst_79 = arith.constant dense<0xFF800000> : vector<2x8xf32>
    %176 = vector.multi_reduction <maximumf>, %175, %cst_79 [2] : vector<2x8x8xf32> to vector<2x8xf32>
    %177 = vector.shape_cast %176 : vector<2x8xf32> to vector<2x8x1xf32>
    %178 = vector.broadcast %177 : vector<2x8x1xf32> to vector<2x8x8xf32>
    %179 = arith.subf %175, %178 : vector<2x8x8xf32>
    %180 = math.exp %179 : vector<2x8x8xf32>
    %cst_80 = arith.constant dense<0.000000e+00> : vector<2x8xf32>
    %181 = vector.multi_reduction <add>, %180, %cst_80 [2] : vector<2x8x8xf32> to vector<2x8xf32>
    %182 = vector.shape_cast %181 : vector<2x8xf32> to vector<2x8x1xf32>
    %183 = tpu.reciprocal %182 {approx = true} : vector<2x8x1xf32> -> vector<2x8x1xf32>
    %184 = vector.broadcast %183 : vector<2x8x1xf32> to vector<2x8x8xf32>
    %185 = arith.mulf %180, %184 : vector<2x8x8xf32>
    "tpu.trace_start"() <{level = 10 : i32, message = "bqk,bkd->bqd"}> : () -> ()
    %cst_81 = arith.constant dense<0.000000e+00> : vector<2x8x8xf32>
    %186 = tpu.matmul %185, %174, %cst_81 {dimension_numbers = #tpu.dot_dimension_numbers<[2], [1], [1], [2], [0, 0, 0, 1, 1, 2], [0], [0]>} : vector<2x8x8xf32>, vector<2x8x8xf32>, vector<2x8x8xf32> -> vector<2x8x8xf32>
    "tpu.trace_stop"() : () -> ()
    %187 = vector.shape_cast %186 : vector<2x8x8xf32> to vector<16x8xf32>
    %188 = vector.extract_strided_slice %152 {offsets = [8, 0], sizes = [8, 64], strides = [1, 1]} : vector<32x64xf32> to vector<8x64xf32>
    %cst_82 = arith.constant dense<0.000000e+00> : vector<16x64xf32>
    %189 = tpu.matmul %187, %188, %cst_82 {dimension_numbers = #tpu.dot_dimension_numbers<[1], [0], [0], [1], [0, 0, 1, 1], [], []>} : vector<16x8xf32>, vector<8x64xf32>, vector<16x64xf32> -> vector<16x64xf32>
    %190 = arith.addf %171, %189 : vector<16x64xf32>
    %191 = vector.extract_strided_slice %143 {offsets = [0, 0, 16], sizes = [2, 8, 8], strides = [1, 1, 1]} : vector<2x8x96xf32> to vector<2x8x8xf32>
    %192 = vector.extract_strided_slice %143 {offsets = [0, 0, 48], sizes = [2, 8, 8], strides = [1, 1, 1]} : vector<2x8x96xf32> to vector<2x8x8xf32>
    %193 = vector.extract_strided_slice %143 {offsets = [0, 0, 80], sizes = [2, 8, 8], strides = [1, 1, 1]} : vector<2x8x96xf32> to vector<2x8x8xf32>
    "tpu.trace_start"() <{level = 10 : i32, message = "bqd,bkd->bqk"}> : () -> ()
    %cst_83 = arith.constant dense<0.000000e+00> : vector<2x8x8xf32>
    %194 = tpu.matmul %191, %192, %cst_83 {dimension_numbers = #tpu.dot_dimension_numbers<[2], [2], [1], [1], [0, 0, 0, 1, 1, 1], [0], [0]>} : vector<2x8x8xf32>, vector<2x8x8xf32>, vector<2x8x8xf32> -> vector<2x8x8xf32>
    "tpu.trace_stop"() : () -> ()
    %cst_84 = arith.constant dense<0xFF800000> : vector<2x8xf32>
    %195 = vector.multi_reduction <maximumf>, %194, %cst_84 [2] : vector<2x8x8xf32> to vector<2x8xf32>
    %196 = vector.shape_cast %195 : vector<2x8xf32> to vector<2x8x1xf32>
    %197 = vector.broadcast %196 : vector<2x8x1xf32> to vector<2x8x8xf32>
    %198 = arith.subf %194, %197 : vector<2x8x8xf32>
    %199 = math.exp %198 : vector<2x8x8xf32>
    %cst_85 = arith.constant dense<0.000000e+00> : vector<2x8xf32>
    %200 = vector.multi_reduction <add>, %199, %cst_85 [2] : vector<2x8x8xf32> to vector<2x8xf32>
    %201 = vector.shape_cast %200 : vector<2x8xf32> to vector<2x8x1xf32>
    %202 = tpu.reciprocal %201 {approx = true} : vector<2x8x1xf32> -> vector<2x8x1xf32>
    %203 = vector.broadcast %202 : vector<2x8x1xf32> to vector<2x8x8xf32>
    %204 = arith.mulf %199, %203 : vector<2x8x8xf32>
    "tpu.trace_start"() <{level = 10 : i32, message = "bqk,bkd->bqd"}> : () -> ()
    %cst_86 = arith.constant dense<0.000000e+00> : vector<2x8x8xf32>
    %205 = tpu.matmul %204, %193, %cst_86 {dimension_numbers = #tpu.dot_dimension_numbers<[2], [1], [1], [2], [0, 0, 0, 1, 1, 2], [0], [0]>} : vector<2x8x8xf32>, vector<2x8x8xf32>, vector<2x8x8xf32> -> vector<2x8x8xf32>
    "tpu.trace_stop"() : () -> ()
    %206 = vector.shape_cast %205 : vector<2x8x8xf32> to vector<16x8xf32>
    %207 = vector.extract_strided_slice %152 {offsets = [16, 0], sizes = [8, 64], strides = [1, 1]} : vector<32x64xf32> to vector<8x64xf32>
    %cst_87 = arith.constant dense<0.000000e+00> : vector<16x64xf32>
    %208 = tpu.matmul %206, %207, %cst_87 {dimension_numbers = #tpu.dot_dimension_numbers<[1], [0], [0], [1], [0, 0, 1, 1], [], []>} : vector<16x8xf32>, vector<8x64xf32>, vector<16x64xf32> -> vector<16x64xf32>
    %209 = arith.addf %190, %208 : vector<16x64xf32>
    %210 = vector.extract_strided_slice %143 {offsets = [0, 0, 24], sizes = [2, 8, 8], strides = [1, 1, 1]} : vector<2x8x96xf32> to vector<2x8x8xf32>
    %211 = vector.extract_strided_slice %143 {offsets = [0, 0, 56], sizes = [2, 8, 8], strides = [1, 1, 1]} : vector<2x8x96xf32> to vector<2x8x8xf32>
    %212 = vector.extract_strided_slice %143 {offsets = [0, 0, 88], sizes = [2, 8, 8], strides = [1, 1, 1]} : vector<2x8x96xf32> to vector<2x8x8xf32>
    "tpu.trace_start"() <{level = 10 : i32, message = "bqd,bkd->bqk"}> : () -> ()
    %cst_88 = arith.constant dense<0.000000e+00> : vector<2x8x8xf32>
    %213 = tpu.matmul %210, %211, %cst_88 {dimension_numbers = #tpu.dot_dimension_numbers<[2], [2], [1], [1], [0, 0, 0, 1, 1, 1], [0], [0]>} : vector<2x8x8xf32>, vector<2x8x8xf32>, vector<2x8x8xf32> -> vector<2x8x8xf32>
    "tpu.trace_stop"() : () -> ()
    %cst_89 = arith.constant dense<0xFF800000> : vector<2x8xf32>
    %214 = vector.multi_reduction <maximumf>, %213, %cst_89 [2] : vector<2x8x8xf32> to vector<2x8xf32>
    %215 = vector.shape_cast %214 : vector<2x8xf32> to vector<2x8x1xf32>
    %216 = vector.broadcast %215 : vector<2x8x1xf32> to vector<2x8x8xf32>
    %217 = arith.subf %213, %216 : vector<2x8x8xf32>
    %218 = math.exp %217 : vector<2x8x8xf32>
    %cst_90 = arith.constant dense<0.000000e+00> : vector<2x8xf32>
    %219 = vector.multi_reduction <add>, %218, %cst_90 [2] : vector<2x8x8xf32> to vector<2x8xf32>
    %220 = vector.shape_cast %219 : vector<2x8xf32> to vector<2x8x1xf32>
    %221 = tpu.reciprocal %220 {approx = true} : vector<2x8x1xf32> -> vector<2x8x1xf32>
    %222 = vector.broadcast %221 : vector<2x8x1xf32> to vector<2x8x8xf32>
    %223 = arith.mulf %218, %222 : vector<2x8x8xf32>
    "tpu.trace_start"() <{level = 10 : i32, message = "bqk,bkd->bqd"}> : () -> ()
    %cst_91 = arith.constant dense<0.000000e+00> : vector<2x8x8xf32>
    %224 = tpu.matmul %223, %212, %cst_91 {dimension_numbers = #tpu.dot_dimension_numbers<[2], [1], [1], [2], [0, 0, 0, 1, 1, 2], [0], [0]>} : vector<2x8x8xf32>, vector<2x8x8xf32>, vector<2x8x8xf32> -> vector<2x8x8xf32>
    "tpu.trace_stop"() : () -> ()
    %225 = vector.shape_cast %224 : vector<2x8x8xf32> to vector<16x8xf32>
    %226 = vector.extract_strided_slice %152 {offsets = [24, 0], sizes = [8, 64], strides = [1, 1]} : vector<32x64xf32> to vector<8x64xf32>
    %cst_92 = arith.constant dense<0.000000e+00> : vector<16x64xf32>
    %227 = tpu.matmul %225, %226, %cst_92 {dimension_numbers = #tpu.dot_dimension_numbers<[1], [0], [0], [1], [0, 0, 1, 1], [], []>} : vector<16x8xf32>, vector<8x64xf32>, vector<16x64xf32> -> vector<16x64xf32>
    %228 = arith.addf %209, %227 : vector<16x64xf32>
    %229 = vector.extract_strided_slice %228 {offsets = [0, 0], sizes = [16, 32], strides = [1, 1]} : vector<16x64xf32> to vector<16x32xf32>
    %230 = vector.extract_strided_slice %228 {offsets = [0, 32], sizes = [16, 32], strides = [1, 1]} : vector<16x64xf32> to vector<16x32xf32>
    %231 = arith.negf %230 : vector<16x32xf32>
    %232 = math.exp %231 : vector<16x32xf32>
    %cst_93 = arith.constant 1.000000e+00 : f32
    %233 = vector.broadcast %cst_93 : f32 to vector<16x32xf32>
    %234 = arith.addf %233, %232 : vector<16x32xf32>
    %235 = arith.divf %233, %234 : vector<16x32xf32>
    %236 = arith.mulf %229, %235 : vector<16x32xf32>
    %c1_94 = arith.constant 1 : index
    %c0_95 = arith.constant 0 : index
    %c0_96 = arith.constant 0 : index
    %237 = vector.load %arg7[%c1_94, %c0_95, %c0_96] : memref<2x32x32xf32, #tpu.memory_space<vmem>>, vector<1x32x32xf32>
    %238 = vector.shape_cast %237 : vector<1x32x32xf32> to vector<32x32xf32>
    %cst_97 = arith.constant dense<0.000000e+00> : vector<16x32xf32>
    %239 = tpu.matmul %236, %238, %cst_97 {dimension_numbers = #tpu.dot_dimension_numbers<[1], [0], [0], [1], [0, 0, 1, 1], [], []>} : vector<16x32xf32>, vector<32x32xf32>, vector<16x32xf32> -> vector<16x32xf32>
    %c1_98 = arith.constant 1 : index
    %c0_99 = arith.constant 0 : index
    %c0_100 = arith.constant 0 : index
    %240 = vector.load %arg8[%c1_98, %c0_99, %c0_100] : memref<2x1x32xf32, #tpu.memory_space<vmem>>, vector<1x1x32xf32>
    %241 = vector.shape_cast %240 : vector<1x1x32xf32> to vector<1x32xf32>
    %242 = vector.broadcast %241 : vector<1x32xf32> to vector<16x32xf32>
    %243 = arith.addf %239, %242 : vector<16x32xf32>
    %c1_101 = arith.constant 1 : index
    %c0_102 = arith.constant 0 : index
    %c0_103 = arith.constant 0 : index
    %244 = vector.load %arg9[%c1_101, %c0_102, %c0_103] : memref<2x1x32xf32, #tpu.memory_space<vmem>>, vector<1x1x32xf32>
    %245 = vector.shape_cast %244 : vector<1x1x32xf32> to vector<1x32xf32>
    %c1_104 = arith.constant 1 : index
    %c0_105 = arith.constant 0 : index
    %c0_106 = arith.constant 0 : index
    %246 = vector.load %arg10[%c1_104, %c0_105, %c0_106] : memref<2x1x32xf32, #tpu.memory_space<vmem>>, vector<1x1x32xf32>
    %247 = vector.shape_cast %246 : vector<1x1x32xf32> to vector<1x32xf32>
    %cst_107 = arith.constant dense<0.000000e+00> : vector<16xf32>
    %248 = vector.multi_reduction <add>, %243, %cst_107 [1] : vector<16x32xf32> to vector<16xf32>
    %249 = vector.shape_cast %248 : vector<16xf32> to vector<16x1xf32>
    %cst_108 = arith.constant 3.200000e+01 : f32
    %250 = vector.broadcast %cst_108 : f32 to vector<16x1xf32>
    %251 = arith.divf %249, %250 : vector<16x1xf32>
    %252 = vector.broadcast %251 : vector<16x1xf32> to vector<16x32xf32>
    %253 = arith.subf %243, %252 : vector<16x32xf32>
    %254 = arith.mulf %253, %253 : vector<16x32xf32>
    %cst_109 = arith.constant dense<0.000000e+00> : vector<16xf32>
    %255 = vector.multi_reduction <add>, %254, %cst_109 [1] : vector<16x32xf32> to vector<16xf32>
    %256 = vector.shape_cast %255 : vector<16xf32> to vector<16x1xf32>
    %cst_110 = arith.constant 0.0322580636 : f32
    %257 = vector.broadcast %cst_110 : f32 to vector<16x1xf32>
    %258 = arith.mulf %256, %257 : vector<16x1xf32>
    %259 = math.sqrt %258 : vector<16x1xf32>
    %cst_111 = arith.constant 9.99999997E-7 : f32
    %260 = vector.broadcast %cst_111 : f32 to vector<16x1xf32>
    %261 = arith.addf %259, %260 : vector<16x1xf32>
    %262 = tpu.reciprocal %261 {approx = true} : vector<16x1xf32> -> vector<16x1xf32>
    %263 = vector.broadcast %262 : vector<16x1xf32> to vector<16x32xf32>
    %264 = arith.mulf %253, %263 : vector<16x32xf32>
    %265 = vector.broadcast %245 : vector<1x32xf32> to vector<16x32xf32>
    %266 = arith.mulf %265, %264 : vector<16x32xf32>
    %267 = vector.broadcast %247 : vector<1x32xf32> to vector<16x32xf32>
    %268 = arith.addf %266, %267 : vector<16x32xf32>
    %269 = arith.addf %135, %268 : vector<16x32xf32>
    %c0_112 = arith.constant 0 : index
    %c0_113 = arith.constant 0 : index
    %270 = vector.load %arg11[%c0_112, %c0_113] : memref<1x32xf32, #tpu.memory_space<vmem>>, vector<1x32xf32>
    %c0_114 = arith.constant 0 : index
    %c0_115 = arith.constant 0 : index
    %271 = vector.load %arg12[%c0_114, %c0_115] : memref<1x32xf32, #tpu.memory_space<vmem>>, vector<1x32xf32>
    %cst_116 = arith.constant dense<0.000000e+00> : vector<16xf32>
    %272 = vector.multi_reduction <add>, %269, %cst_116 [1] : vector<16x32xf32> to vector<16xf32>
    %273 = vector.shape_cast %272 : vector<16xf32> to vector<16x1xf32>
    %cst_117 = arith.constant 3.200000e+01 : f32
    %274 = vector.broadcast %cst_117 : f32 to vector<16x1xf32>
    %275 = arith.divf %273, %274 : vector<16x1xf32>
    %276 = vector.broadcast %275 : vector<16x1xf32> to vector<16x32xf32>
    %277 = arith.subf %269, %276 : vector<16x32xf32>
    %278 = arith.mulf %277, %277 : vector<16x32xf32>
    %cst_118 = arith.constant dense<0.000000e+00> : vector<16xf32>
    %279 = vector.multi_reduction <add>, %278, %cst_118 [1] : vector<16x32xf32> to vector<16xf32>
    %280 = vector.shape_cast %279 : vector<16xf32> to vector<16x1xf32>
    %cst_119 = arith.constant 0.0322580636 : f32
    %281 = vector.broadcast %cst_119 : f32 to vector<16x1xf32>
    %282 = arith.mulf %280, %281 : vector<16x1xf32>
    %283 = math.sqrt %282 : vector<16x1xf32>
    %cst_120 = arith.constant 9.99999997E-7 : f32
    %284 = vector.broadcast %cst_120 : f32 to vector<16x1xf32>
    %285 = arith.addf %283, %284 : vector<16x1xf32>
    %286 = tpu.reciprocal %285 {approx = true} : vector<16x1xf32> -> vector<16x1xf32>
    %287 = vector.broadcast %286 : vector<16x1xf32> to vector<16x32xf32>
    %288 = arith.mulf %277, %287 : vector<16x32xf32>
    %289 = vector.broadcast %270 : vector<1x32xf32> to vector<16x32xf32>
    %290 = arith.mulf %289, %288 : vector<16x32xf32>
    %291 = vector.broadcast %271 : vector<1x32xf32> to vector<16x32xf32>
    %292 = arith.addf %290, %291 : vector<16x32xf32>
    %c0_121 = arith.constant 0 : index
    %c0_122 = arith.constant 0 : index
    %293 = vector.load %arg13[%c0_121, %c0_122] : memref<32x64xf32, #tpu.memory_space<vmem>>, vector<32x64xf32>
    %cst_123 = arith.constant dense<0.000000e+00> : vector<16x64xf32>
    %294 = tpu.matmul %292, %293, %cst_123 {dimension_numbers = #tpu.dot_dimension_numbers<[1], [0], [0], [1], [0, 0, 1, 1], [], []>} : vector<16x32xf32>, vector<32x64xf32>, vector<16x64xf32> -> vector<16x64xf32>
    %c0_124 = arith.constant 0 : index
    %c0_125 = arith.constant 0 : index
    %295 = vector.load %arg14[%c0_124, %c0_125] : memref<1x64xf32, #tpu.memory_space<vmem>>, vector<1x64xf32>
    %296 = vector.broadcast %295 : vector<1x64xf32> to vector<16x64xf32>
    %297 = arith.addf %294, %296 : vector<16x64xf32>
    %298 = vector.shape_cast %297 : vector<16x64xf32> to vector<2x8x64xf32>
    %c0_126 = arith.constant 0 : index
    %c0_127 = arith.constant 0 : index
    %c0_128 = arith.constant 0 : index
    %299 = vector.load %arg15[%c0_126, %c0_127, %c0_128] : memref<2x8x64xf32, #tpu.memory_space<vmem>>, vector<2x8x64xf32>
    tpu.vector_store %arg15[%c0_126, %c0_127, %c0_128], %298 {strides = array<i32>} : memref<2x8x64xf32, #tpu.memory_space<vmem>>, vector<2x8x64xf32>,
    return
  }
  func.func @transform_0(%arg0: i32) -> (i32, i32, i32) {
    %c0_i32 = arith.constant 0 : i32
    %c0_i32_0 = arith.constant 0 : i32
    %c0_i32_1 = arith.constant 0 : i32
    return %arg0, %c0_i32, %c0_i32_0 : i32, i32, i32
  }
  func.func @transform_1(%arg0: i32) -> (i32, i32, i32) {
    %c0_i32 = arith.constant 0 : i32
    %c0_i32_0 = arith.constant 0 : i32
    %c0_i32_1 = arith.constant 0 : i32
    %c0_i32_2 = arith.constant 0 : i32
    return %c0_i32, %c0_i32_0, %c0_i32_1 : i32, i32, i32
  }
  func.func @transform_2(%arg0: i32) -> (i32, i32, i32) {
    %c0_i32 = arith.constant 0 : i32
    %c0_i32_0 = arith.constant 0 : i32
    %c0_i32_1 = arith.constant 0 : i32
    %c0_i32_2 = arith.constant 0 : i32
    return %c0_i32, %c0_i32_0, %c0_i32_1 : i32, i32, i32
  }
  func.func @transform_3(%arg0: i32) -> (i32, i32, i32) {
    %c0_i32 = arith.constant 0 : i32
    %c0_i32_0 = arith.constant 0 : i32
    %c0_i32_1 = arith.constant 0 : i32
    %c0_i32_2 = arith.constant 0 : i32
    return %c0_i32, %c0_i32_0, %c0_i32_1 : i32, i32, i32
  }
  func.func @transform_4(%arg0: i32) -> (i32, i32, i32) {
    %c0_i32 = arith.constant 0 : i32
    %c0_i32_0 = arith.constant 0 : i32
    %c0_i32_1 = arith.constant 0 : i32
    %c0_i32_2 = arith.constant 0 : i32
    return %c0_i32, %c0_i32_0, %c0_i32_1 : i32, i32, i32
  }
  func.func @transform_5(%arg0: i32) -> (i32, i32, i32) {
    %c0_i32 = arith.constant 0 : i32
    %c0_i32_0 = arith.constant 0 : i32
    %c0_i32_1 = arith.constant 0 : i32
    %c0_i32_2 = arith.constant 0 : i32
    return %c0_i32, %c0_i32_0, %c0_i32_1 : i32, i32, i32
  }
  func.func @transform_6(%arg0: i32) -> (i32, i32, i32) {
    %c0_i32 = arith.constant 0 : i32
    %c0_i32_0 = arith.constant 0 : i32
    %c0_i32_1 = arith.constant 0 : i32
    %c0_i32_2 = arith.constant 0 : i32
    return %c0_i32, %c0_i32_0, %c0_i32_1 : i32, i32, i32
  }
  func.func @transform_7(%arg0: i32) -> (i32, i32, i32) {
    %c0_i32 = arith.constant 0 : i32
    %c0_i32_0 = arith.constant 0 : i32
    %c0_i32_1 = arith.constant 0 : i32
    %c0_i32_2 = arith.constant 0 : i32
    return %c0_i32, %c0_i32_0, %c0_i32_1 : i32, i32, i32
  }
  func.func @transform_8(%arg0: i32) -> (i32, i32, i32) {
    %c0_i32 = arith.constant 0 : i32
    %c0_i32_0 = arith.constant 0 : i32
    %c0_i32_1 = arith.constant 0 : i32
    %c0_i32_2 = arith.constant 0 : i32
    return %c0_i32, %c0_i32_0, %c0_i32_1 : i32, i32, i32
  }
  func.func @transform_9(%arg0: i32) -> (i32, i32, i32) {
    %c0_i32 = arith.constant 0 : i32
    %c0_i32_0 = arith.constant 0 : i32
    %c0_i32_1 = arith.constant 0 : i32
    %c0_i32_2 = arith.constant 0 : i32
    return %c0_i32, %c0_i32_0, %c0_i32_1 : i32, i32, i32
  }
  func.func @transform_10(%arg0: i32) -> (i32, i32) {
    %c0_i32 = arith.constant 0 : i32
    %c0_i32_0 = arith.constant 0 : i32
    %c0_i32_1 = arith.constant 0 : i32
    return %c0_i32, %c0_i32_0 : i32, i32
  }
  func.func @transform_11(%arg0: i32) -> (i32, i32) {
    %c0_i32 = arith.constant 0 : i32
    %c0_i32_0 = arith.constant 0 : i32
    %c0_i32_1 = arith.constant 0 : i32
    return %c0_i32, %c0_i32_0 : i32, i32
  }
  func.func @transform_12(%arg0: i32) -> (i32, i32) {
    %c0_i32 = arith.constant 0 : i32
    %c0_i32_0 = arith.constant 0 : i32
    %c0_i32_1 = arith.constant 0 : i32
    return %c0_i32, %c0_i32_0 : i32, i32
  }
  func.func @transform_13(%arg0: i32) -> (i32, i32) {
    %c0_i32 = arith.constant 0 : i32
    %c0_i32_0 = arith.constant 0 : i32
    %c0_i32_1 = arith.constant 0 : i32
    return %c0_i32, %c0_i32_0 : i32, i32
  }
  func.func @transform_14(%arg0: i32) -> (i32, i32, i32) {
    %c0_i32 = arith.constant 0 : i32
    %c0_i32_0 = arith.constant 0 : i32
    %c0_i32_1 = arith.constant 0 : i32
    return %arg0, %c0_i32, %c0_i32_0 : i32, i32, i32
  }
}

</mosaic_0001>

<bundles_post_ra>
// kernel: tpu_custom_call.1
= control target key start
LH: loop header
LB: loop body
LE: loop exit
PB: predicated region body
PF: predicated region fallthrough
CT: control target
= control target key end

     0   :  { %19 = vsyncpa [#allocation3], 0  ;;  %s5755_s0 = inlined_call_operand.hbm [shape: f32[2,8,32], index: 0, kind: input, shape index: {}]   ;;  %s5756_s1 = inlined_call_operand.hbm [shape: f32[2,32,96], index: 1, kind: input, shape index: {}]   ;;  %s5757_s2 = inlined_call_operand.vmem [shape: f32[2,1,96], index: 2, kind: input, shape index: {}]   ;;  %s5758_s3 = inlined_call_operand.hbm [shape: f32[2,32,64], index: 3, kind: input, shape index: {}]   ;;  %s5759_s4 = inlined_call_operand.hbm [shape: f32[2,32,64], index: 4, kind: input, shape index: {}]   ;;  %s5760_s5 = inlined_call_operand.vmem [shape: f32[2,1,64], index: 5, kind: input, shape index: {}]   ;;  %s5761_s6 = inlined_call_operand.hbm [shape: f32[2,32,32], index: 6, kind: input, shape index: {}]   ;;  %s5762_s7 = inlined_call_operand.vmem [shape: f32[2,1,32], index: 7, kind: input, shape index: {}]   ;;  %s5763_s8 = inlined_call_operand.vmem [shape: f32[2,1,32], index: 8, kind: input, shape index: {}]   ;;  %s5764_s9 = inlined_call_operand.vmem [shape: f32[2,1,32], index: 9, kind: input, shape index: {}]   ;;  %s5765_s10 = inlined_call_operand.vmem [shape: f32[1,32], index: 10, kind: input, shape index: {}]   ;;  %s5766_s11 = inlined_call_operand.vmem [shape: f32[1,32], index: 11, kind: input, shape index: {}]   ;;  %s5767_s12 = inlined_call_operand.vmem [shape: f32[32,64], index: 12, kind: input, shape index: {}]   ;;  %s5768_s13 = inlined_call_operand.vmem [shape: f32[1,64], index: 13, kind: input, shape index: {}]   ;;  %s5769_s14 = inlined_call_operand.hbm [shape: f32[2,8,64], index: 14, kind: output, shape index: {}]  }
   0x1   :  { %20 = vsyncpa [#allocation6], 0 }
   0x2   :  { %21 = vsyncpa [#allocation9], 0 }
   0x3   :  { %22 = vsyncpa [#allocation4], 0  ;;  %s5162_s29 = smov [#allocation5]   ;;  %s5163_s15 = smov [#allocation8]  }
   0x4   :  { %s40_s30 = sshll.u32 %s5162_s29, 4  ;;  %s66_s16 = sshll.u32 %s5163_s15, 4  ;;  %s41_s30 = int_to_ptr.vmem [resolvable:$true] %s40_s30  ;;  %s5258_s16 = int_to_ptr.vmem [resolvable:$true] %s66_s16 }
   0x5   :  { %s5022_s19 = scalar_lea.hbm %s5756_s1, 1024 }
   0x6   :  { %p5023_p0 = scmp.ne.s32.totalorder %s5756_s1, %s5022_s19  ;;  %p5026_p1 = scmp.lt.u32.totalorder %s5022_s19, %s5756_s1 }
   0x8   :  { %p5028_p2 = pnand %p5026_p1, %p5023_p0 }
   0xa   :  { %5031 = shalt.err (!%p5028_p2)
}
   0xb   :  { %s5032_s24 = scalar_lea.vmem %s41_s30, 1024  ;;  %p5037_p4 = scmp.lt.s32.totalorder %s41_s30, %s41_s30 }
   0xc   :  { %p5033_p3 = scmp.ne.s32.totalorder %s41_s30, %s5032_s24  ;;  %p5038_p5 = scmp.lt.s32.totalorder %s5032_s24, %s5032_s24 }
   0xe   :  { %p5039_p6 = por %p5038_p5, %p5037_p4 }
  0x10   :  { %p5040_p7 = pnand %p5039_p6, %p5033_p3 }
  0x12   :  { %5043 = shalt.err (!%p5040_p7)
}
  0x13   :  { %s5164_s25 = smov 128   ;;  %s5165_s26 = smov 8  }
  0x14   :  { %46 = dma.hbm_to_vmem [thread:$0]  %s5756_s1, 1024, %s41_s30, [#allocation6], %s5164_s25, %s5164_s25, %s5165_s26  }
  0x15   :  { %s5044_s17 = scalar_lea.hbm %s5759_s4, 1024 }
  0x16   :  { %p5045_p8 = scmp.ne.s32.totalorder %s5759_s4, %s5044_s17  ;;  %p5048_p9 = scmp.lt.u32.totalorder %s5044_s17, %s5759_s4 }
  0x18   :  { %p5050_p10 = pnand %p5048_p9, %p5045_p8 }
  0x1a   :  { %5053 = shalt.err (!%p5050_p10)
}
  0x1b   :  { %s5054_s22 = scalar_lea.vmem %s5258_s16, 1024  ;;  %p5059_p12 = scmp.lt.s32.totalorder %s5258_s16, %s5258_s16 }
  0x1c   :  { %p5055_p11 = scmp.ne.s32.totalorder %s5258_s16, %s5054_s22  ;;  %p5060_p13 = scmp.lt.s32.totalorder %s5054_s22, %s5054_s22 }
  0x1e   :  { %p5061_p0 = por %p5060_p13, %p5059_p12 }
  0x20   :  { %p5062_p1 = pnand %p5061_p0, %p5055_p11 }
  0x22   :  { %5065 = shalt.err (!%p5062_p1)
}
  0x23   :  { %72 = dma.hbm_to_vmem [thread:$0]  %s5759_s4, 1024, %s5258_s16, [#allocation9], %s5164_s25, %s5164_s25, %s5165_s26  }
  0x24   :  { %s5166_s23 = smov [#allocation2]   ;;  %s5167_s27 = smov [#allocation7]  }
  0x25   :  { %s28_s24 = sshll.u32 %s5166_s23, 4  ;;  %s54_s28 = sshll.u32 %s5167_s27, 4  ;;  %s29_s24 = int_to_ptr.vmem [resolvable:$true] %s28_s24  ;;  %s5295_s28 = int_to_ptr.vmem [resolvable:$true] %s54_s28 }
  0x26   :  { %s5066_s17 = scalar_lea.hbm %s5755_s0, 256 }
  0x27   :  { %p5067_p2 = scmp.ne.s32.totalorder %s5755_s0, %s5066_s17  ;;  %p5070_p3 = scmp.lt.u32.totalorder %s5066_s17, %s5755_s0 }
  0x29   :  { %p5072_p4 = pnand %p5070_p3, %p5067_p2 }
  0x2b   :  { %5075 = shalt.err (!%p5072_p4)
}
  0x2c   :  { %s5076_s4 = scalar_lea.vmem %s29_s24, 256  ;;  %p5081_p6 = scmp.lt.s32.totalorder %s29_s24, %s29_s24 }
  0x2d   :  { %p5077_p5 = scmp.ne.s32.totalorder %s29_s24, %s5076_s4  ;;  %p5082_p7 = scmp.lt.s32.totalorder %s5076_s4, %s5076_s4 }
  0x2f   :  { %p5083_p8 = por %p5082_p7, %p5081_p6 }
  0x31   :  { %p5084_p9 = pnand %p5083_p8, %p5077_p5 }
  0x33   :  { %5087 = shalt.err (!%p5084_p9)
}
  0x34   :  { %34 = dma.hbm_to_vmem [thread:$0]  %s5755_s0, 256, %s29_s24, [#allocation3], %s5164_s25, %s5164_s25, %s5165_s26  }
  0x35   :  { %s5088_s23 = scalar_lea.hbm %s5758_s3, 1024 }
  0x36   :  { %p5089_p10 = scmp.ne.s32.totalorder %s5758_s3, %s5088_s23  ;;  %p5092_p11 = scmp.lt.u32.totalorder %s5088_s23, %s5758_s3 }
  0x38   :  { %p5094_p12 = pnand %p5092_p11, %p5089_p10 }
  0x3a   :  { %5097 = shalt.err (!%p5094_p12)
}
  0x3b   :  { %s5098_s18 = scalar_lea.vmem %s5295_s28, 1024  ;;  %p5103_p0 = scmp.lt.s32.totalorder %s5295_s28, %s5295_s28 }
  0x3c   :  { %p5099_p13 = scmp.ne.s32.totalorder %s5295_s28, %s5098_s18  ;;  %p5104_p1 = scmp.lt.s32.totalorder %s5098_s18, %s5098_s18 }
  0x3e   :  { %p5105_p2 = por %p5104_p1, %p5103_p0 }
  0x40   :  { %p5106_p3 = pnand %p5105_p2, %p5099_p13 }
  0x42   :  { %5109 = shalt.err (!%p5106_p3)
}
  0x43   :  { %60 = dma.hbm_to_vmem [thread:$0]  %s5758_s3, 1024, %s5295_s28, [#allocation6], %s5164_s25, %s5164_s25, %s5165_s26  }
  0x44   :  { %s5168_s19 = smov [#allocation10]   ;;  %s5110_s16 = scalar_lea.hbm %s5761_s6, 1024 }
  0x45   :  { %s80_s20 = sshll.u32 %s5168_s19, 4  ;;  %p5111_p4 = scmp.ne.s32.totalorder %s5761_s6, %s5110_s16  ;;  %s81_s20 = int_to_ptr.vmem [resolvable:$true] %s80_s20 }
  0x46   :  { %p5114_p5 = scmp.lt.u32.totalorder %s5110_s16, %s5761_s6 }
  0x48   :  { %p5116_p6 = pnand %p5114_p5, %p5111_p4 }
  0x4a   :  { %5119 = shalt.err (!%p5116_p6)
}
  0x4b   :  { %s5120_s27 = scalar_lea.vmem %s81_s20, 1024  ;;  %p5125_p8 = scmp.lt.s32.totalorder %s81_s20, %s81_s20 }
  0x4c   :  { %p5121_p7 = scmp.ne.s32.totalorder %s81_s20, %s5120_s27  ;;  %p5126_p9 = scmp.lt.s32.totalorder %s5120_s27, %s5120_s27 }
  0x4e   :  { %p5127_p10 = por %p5126_p9, %p5125_p8 }
  0x50   :  { %p5128_p11 = pnand %p5127_p10, %p5121_p7 }
  0x52   :  { %5131 = shalt.err (!%p5128_p11)
}
  0x53   :  { %86 = dma.hbm_to_vmem [thread:$0]  %s5761_s6, 1024, %s81_s20, [#allocation9], %s5164_s25, %s5164_s25, %s5165_s26  }
  0x54   :  { %5154 = dma.done.wait [#allocation3], 256  }
  0x55   :  { %5155 = vsyncadd [#allocation3], 4294967040 }
  0x56   :  { %5156 = dma.done.wait [#allocation6], 2048  }
  0x57   :  { %5157 = vsyncadd [#allocation6], 4294965248 }
  0x58   :  { %5158 = dma.done.wait [#allocation9], 2048  }
  0x59   :  { %5159 = vsyncadd [#allocation9], 4294965248  ;;  %vm129_vm0 = vcmask 261120   ;;  %v118_v0 = vld [vmem:[#allocation5] sm:$0xff]  ;;  %v119_v1 = vld [vmem:[#allocation5 + $0x8] sm:$0xff]  ;;  %v5169_v13 = vmov 0.0  }
  0x5a   :  { %v120_v2 = vld [vmem:[#allocation5 + $0x10] sm:$0xff]  ;;  %v4821_v3 = vpack.c.bf16 %v119_v1, %v118_v0  ;;  %v121_v4 = vld [vmem:[#allocation5 + $0x18] sm:$0xff]  ;;  %v211_v8 = vld [vmem:[#allocation8] sm:$0xff]  ;;  %vm5170_vm1 = vmmov 0   ;;  %s5171_s15 = smov 96   ;;  %s5172_s17 = smov 64  }
  0x5b   :  { %v5347_v5 = vld [vmem:[#allocation2] sm:$0xff]  ;;  %v4825_v6 = vpack.c.bf16 %v121_v4, %v120_v2  ;;  %v5353_v7 = vld [vmem:[#allocation2 + $0x8] sm:$0xff]  ;;  %v212_v9 = vld [vmem:[#allocation8 + $0x8] sm:$0xff]  ;;  %s5173_s18 = smov 120   ;;  %s5174_s0 = smov 88   ;;  %vm304_vm2 = vcmask 64512  }
  0x5c   :  { %4552 = vmatprep.mubr.msk.f32.mxu0 %vm129_vm0, %v5347_v5  ;;  %4563 = vmatprep.mubr.msk.f32.mxu1 %vm129_vm0, %v5347_v5  ;;  %v213_v10 = vld [vmem:[#allocation8 + $0x10] sm:$0xff]  ;;  %v4829_v11 = vpack.c.bf16 %v212_v9, %v211_v8  ;;  %v214_v12 = vld [vmem:[#allocation8 + $0x18] sm:$0xff]  ;;  %s5175_s24 = smov 56   ;;  %s5176_s19 = smov 80   ;;  %v297_v50 = vld [vmem:[#allocation7] sm:$0xff]  ;;  %vm4292_vm15 = vcmask 523264  }
  0x5d   :  { %4822 = vmatprep.subr.bf16.mxu0 %v4821_v3  ;;  %v4833_v14 = vpack.c.bf16 %v214_v12, %v213_v10  ;;  %v4314_v15 = vld [vmem:[%s5757_s2] ss:$0 sm:$0xff]  ;;  %s5177_s20 = smov 112   ;;  %v298_v10 = vld [vmem:[#allocation7 + $0x8] sm:$0xff]  ;;  %s5178_s21 = smov 72  }
  0x5e   :  { %4824 = vmatpush3.bf16.msra.mxu0 %v4821_v3  ;;  %4830 = vmatprep.subr.bf16.mxu1 %v4829_v11  ;;  %s5179_s4 = smov 104   ;;  %s5180_s16 = smov 48  }
  0x5f   :  { %4826 = vmatprep.subr.bf16.mxu0 %v4825_v6  ;;  %4832 = vmatpush3.bf16.msra.mxu1 %v4829_v11  ;;  %s5181_s22 = smov 40  }
  0x60   :  { %4834 = vmatprep.subr.bf16.mxu1 %v4833_v14 }
  0x62   :  { %4828 = vmatpush3.bf16.msra.mxu0 %v4825_v6 }
  0x63   :  { %4576 = vmatprep.subr.mxu0 %v5169_v13  ;;  %4836 = vmatpush3.bf16.msra.mxu1 %v4833_v14 }
  0x64   :  { %4566 = vmatprep.subr.mxu1 %v5169_v13 }
  0x65   :  { %4553 = vmatmul.mubr.msk.f32.vlgmr.msra.gmra.mrb[0].mxu0 %vm129_vm0, %v5353_v7 }
  0x66   :  { %4564 = vmatmul.mubr.msk.f32.vlgmr.msra.gmra.mrb[0].mxu1 %vm129_vm0, %v5353_v7  ;;  %4578 = vmatprep.mubr.msk.f32.mxu0 %vm5170_vm1, %v5169_v13 }
  0x67   :  { %4568 = vmatprep.mubr.msk.f32.mxu1 %vm5170_vm1, %v5169_v13 }
 0x138   :  { %v4554_v16 = vpop.f32.mrb[0].mxu0 }
 0x139   :  { %v202_v17 = vpop.f32.mrb[1].mxu0  ;;  %v5372_v19 = vadd.f32 %v4554_v16, %v4314_v15 }
 0x13a   :  { %v5368_v18 = vadd.f32 %v4314_v15, %v202_v17 }
 0x13c   :  { %302 = vrot.lane.b32.xlu0 %v5368_v18, %s5171_s15 }
 0x140   :  { %380 = vrot.lane.b32.xlu0 %v5372_v19, %s5171_s15 }
 0x144   :  { %478 = vrot.lane.b32.xlu0 %v5368_v18, %s5172_s17 }
 0x148   :  { %713 = vrot.lane.b32.xlu0 %v5368_v18, %s5173_s18 }
 0x14c   :  { %793 = vrot.lane.b32.xlu0 %v5372_v19, %s5174_s0 }
 0x150   :  { %791 = vrot.lane.b32.xlu0 %v5372_v19, %s5173_s18 }
 0x1ae   :  { %v303_v20 = vpop.permute.xlu0 %302 }
 0x1af   :  { %4567 = vmatpush3.xpose.msk.msra.mxu1 %vm304_vm2, %v303_v20 }
 0x1b0   :  { %4571 = vmatprep.subr.mxu1 %v5169_v13 }
 0x1b2   :  { %4569 = vmatmul.mubr.msk.f32.vlgmr.msra.gmra.mrb[2].mxu1 %vm304_vm2, %v5368_v18  ;;  %v381_v21 = vpop.permute.xlu0 %380 }
 0x1b3   :  { %4572 = vmatpush3.xpose.msk.msra.mxu1 %vm304_vm2, %v381_v21  ;;  %4573 = vmatprep.mubr.msk.f32.mxu1 %vm5170_vm1, %v5169_v13 }
 0x1b4   :  { %4581 = vmatprep.subr.mxu1 %v5169_v13 }
 0x1b6   :  { %4574 = vmatmul.mubr.msk.f32.vlgmr.msra.gmra.mrb[4].mxu1 %vm304_vm2, %v5372_v19  ;;  %v479_v22 = vpop.permute.xlu0 %478 }
 0x1b7   :  { %4577 = vmatpush3.msra.mxu0 %v479_v22  ;;  %4583 = vmatprep.mubr.msk.f32.mxu1 %vm5170_vm1, %v5169_v13 }
 0x1b8   :  { %4591 = vmatprep.subr.mxu0 %v5169_v13 }
 0x1ba   :  { %v714_v29 = vpop.permute.xlu0 %713 }
 0x1be   :  { %v794_v30 = vpop.permute.xlu0 %793 }
 0x1c2   :  { %v792_v31 = vpop.permute.xlu0 %791 }
 0x285   :  { %v375_v23 = vpop.f32.mrb[2].mxu1 }
 0x286   :  { %v4570_v24 = vpop.f32.mrb[3].mxu1  ;;  %v456_v25 = vsel %vm304_vm2, %v375_v23, -inf }
 0x287   :  { %457 = vmax.xlane.f32.xlu1 %v456_v25 }
 0x289   :  { %v452_v26 = vpop.f32.mrb[4].mxu1 }
 0x28a   :  { %v4575_v27 = vpop.f32.mrb[5].mxu1  ;;  %v459_v28 = vsel %vm304_vm2, %v452_v26, -inf }
 0x28b   :  { %460 = vmax.xlane.f32.xlu0 %v459_v28 }
 0x2a1   :  { %554 = vrot.lane.b32.xlu0 %v5372_v19, %s5172_s17 }
 0x2a5   :  { %891 = vrot.lane.b32.xlu0 %v5368_v18, %s5175_s24 }
 0x2a9   :  { %1128 = vrot.lane.b32.xlu0 %v5368_v18, %s5176_s19 }
 0x2ad   :  { %1126 = vrot.lane.b32.xlu0 %v5368_v18, %s5177_s20 }
 0x2b1   :  { %1206 = vrot.lane.b32.xlu0 %v5372_v19, %s5176_s19 }
 0x2b5   :  { %1204 = vrot.lane.b32.xlu0 %v5372_v19, %s5177_s20 }
 0x314   :  { %v458_v32 = vpop.xlane.xlu1 %457 }
 0x315   :  { %v462_v33 = vsub.f32 %v375_v23, %v458_v32 }
 0x317   :  { %v464_v34 = vmul.f32 1.442695, %v462_v33 }
 0x318   :  { %v461_v35 = vpop.xlane.xlu0 %460 }
 0x319   :  { %4918 = vpow2.f32 %v464_v34  ;;  %v463_v39 = vsub.f32 %v452_v26, %v461_v35 }
 0x31b   :  { %v466_v40 = vmul.f32 1.442695, %v463_v39 }
 0x31c   :  { %v555_v36 = vpop.permute.xlu0 %554 }
 0x31d   :  { %4582 = vmatpush3.msra.mxu1 %v555_v36  ;;  %4920 = vpow2.f32 %v466_v40 }
 0x31e   :  { %4586 = vmatprep.subr.mxu1 %v297_v50 }
 0x320   :  { %v892_v60 = vpop.permute.xlu0 %891 }
 0x323   :  { %v4919_v37 = vpop.eup %4918 }
 0x324   :  { %v468_v38 = vsel %vm304_vm2, %v4919_v37, 0.0  ;;  %v1129_v20 = vpop.permute.xlu0 %1128 }
 0x325   :  { %469 = vadd.xlane.f32.xlu1 %v468_v38 }
 0x327   :  { %v4921_v41 = vpop.eup %4920 }
 0x328   :  { %v471_v42 = vsel %vm304_vm2, %v4921_v41, 0.0  ;;  %v1127_v22 = vpop.permute.xlu0 %1126 }
 0x32c   :  { %v1207_v25 = vpop.permute.xlu0 %1206 }
 0x330   :  { %v1205_v28 = vpop.permute.xlu0 %1204 }
 0x336   :  { %715 = vrot.lane.b32.xlu1 %v5368_v18, %s5174_s0 }
 0x35a   :  { %472 = vadd.xlane.f32.xlu1 %v471_v42 }
 0x3b2   :  { %v470_v43 = vpop.xlane.xlu1 %469 }
 0x3b3   :  { %4922 = vrcp.f32 %v470_v43 }
 0x3b6   :  { %v716_v46 = vpop.permute.xlu1 %715 }
 0x3bd   :  { %v4923_v44 = vpop.eup %4922 }
 0x3be   :  { %v476_v45 = vmul.f32 %v4923_v44, %v4919_v37 }
 0x3c0   :  { %4579 = vmatmul.mubr.msk.f32.vlgmr.msra.gmra.mrb[2].mxu0 %vm304_vm2, %v476_v45 }
 0x3c1   :  { %4592 = vmatpush3.xpose.msk.msra.mxu0 %vm304_vm2, %v716_v46  ;;  %4593 = vmatprep.mubr.msk.f32.mxu0 %vm5170_vm1, %v5169_v13 }
 0x3c2   :  { %4596 = vmatprep.subr.mxu0 %v5169_v13 }
 0x3c4   :  { %4594 = vmatmul.mubr.msk.f32.vlgmr.msra.gmra.mrb[4].mxu0 %vm304_vm2, %v714_v29 }
 0x3c5   :  { %4597 = vmatpush3.xpose.msk.msra.mxu0 %vm304_vm2, %v794_v30  ;;  %4598 = vmatprep.mubr.msk.f32.mxu0 %vm5170_vm1, %v5169_v13 }
 0x3c6   :  { %4606 = vmatprep.subr.mxu0 %v5169_v13 }
 0x3c8   :  { %4599 = vmatmul.mubr.msk.f32.vlgmr.msra.gmra.mrb[6].mxu0 %vm304_vm2, %v792_v31 }
 0x3c9   :  { %4608 = vmatprep.mubr.msk.f32.mxu0 %vm5170_vm1, %v5169_v13 }
 0x3e7   :  { %v473_v47 = vpop.xlane.xlu1 %472 }
 0x3e8   :  { %4924 = vrcp.f32 %v473_v47 }
 0x3f2   :  { %v4925_v48 = vpop.eup %4924 }
 0x3f3   :  { %v477_v49 = vmul.f32 %v4925_v48, %v4921_v41 }
 0x3f5   :  { %4584 = vmatmul.mubr.msk.f32.vlgmr.msra.gmra.mrb[6].mxu1 %vm304_vm2, %v477_v49 }
 0x3f6   :  { %4587 = vmatpush3.msra.mxu1 %v297_v50 }
 0x3f7   :  { %4601 = vmatprep.subr.mxu1 %v5169_v13 }
 0x493   :  { %v550_v51 = vpop.f32.mrb[2].mxu0 }
 0x494   :  { %v4580_v52 = vpop.f32.mrb[3].mxu0  ;;  %4588 = vmatprep.mubr.msk.f32.mxu1 %vm304_vm2, %v550_v51 }
 0x497   :  { %v787_v53 = vpop.f32.mrb[4].mxu0 }
 0x498   :  { %v4595_v54 = vpop.f32.mrb[5].mxu0  ;;  %v869_v55 = vsel %vm304_vm2, %v787_v53, -inf }
 0x499   :  { %870 = vmax.xlane.f32.xlu1 %v869_v55 }
 0x49b   :  { %v865_v56 = vpop.f32.mrb[6].mxu0 }
 0x49c   :  { %v4600_v57 = vpop.f32.mrb[7].mxu0  ;;  %v872_v58 = vsel %vm304_vm2, %v865_v56, -inf }
 0x49d   :  { %873 = vmax.xlane.f32.xlu1 %v872_v58 }
 0x4c8   :  { %v626_v59 = vpop.f32.mrb[6].mxu1 }
 0x4c9   :  { %v4585_v61 = vpop.f32.mrb[7].mxu1  ;;  %4589 = vmatmul.mubr.msk.f32.vlgmr.msra.gmra.mrb[0].mxu1 %vm304_vm2, %v626_v59 }
 0x4ca   :  { %4602 = vmatpush3.msra.mxu1 %v892_v60  ;;  %4603 = vmatprep.mubr.msk.f32.mxu1 %vm5170_vm1, %v5169_v13 }
 0x4cb   :  { %4611 = vmatprep.subr.mxu1 %v298_v10 }
 0x526   :  { %v871_v62 = vpop.xlane.xlu1 %870 }
 0x527   :  { %v875_v63 = vsub.f32 %v787_v53, %v871_v62 }
 0x529   :  { %v877_v0 = vmul.f32 1.442695, %v875_v63 }
 0x52a   :  { %v874_v1 = vpop.xlane.xlu1 %873 }
 0x52b   :  { %4926 = vpow2.f32 %v877_v0  ;;  %v876_v2 = vsub.f32 %v865_v56, %v874_v1  ;;  %v299_v0 = vld [vmem:[#allocation7 + $0x10] sm:$0xff] }
 0x52d   :  { %v879_v3 = vmul.f32 1.442695, %v876_v2 }
 0x52f   :  { %4928 = vpow2.f32 %v879_v3 }
 0x535   :  { %v4927_v4 = vpop.eup %4926 }
 0x536   :  { %v881_v6 = vsel %vm304_vm2, %v4927_v4, 0.0 }
 0x537   :  { %882 = vadd.xlane.f32.xlu1 %v881_v6 }
 0x539   :  { %v4929_v8 = vpop.eup %4928 }
 0x53a   :  { %v884_v9 = vsel %vm304_vm2, %v4929_v8, 0.0 }
 0x53b   :  { %885 = vadd.xlane.f32.xlu1 %v884_v9 }
 0x54c   :  { %967 = vrot.lane.b32.xlu1 %v5372_v19, %s5175_s24 }
 0x5c4   :  { %v883_v11 = vpop.xlane.xlu1 %882 }
 0x5c5   :  { %4930 = vrcp.f32 %v883_v11 }
 0x5c8   :  { %v886_v12 = vpop.xlane.xlu1 %885 }
 0x5c9   :  { %4932 = vrcp.f32 %v886_v12 }
 0x5cc   :  { %v968_v14 = vpop.permute.xlu1 %967 }
 0x5cd   :  { %4607 = vmatpush3.msra.mxu0 %v968_v14 }
 0x5ce   :  { %4616 = vmatprep.subr.mxu0 %v5169_v13 }
 0x5cf   :  { %v4931_v15 = vpop.eup %4930 }
 0x5d0   :  { %v889_v16 = vmul.f32 %v4931_v15, %v4927_v4 }
 0x5d2   :  { %4604 = vmatmul.mubr.msk.f32.vlgmr.msra.gmra.mrb[8].mxu1 %vm304_vm2, %v889_v16 }
 0x5d3   :  { %v4933_v17 = vpop.eup %4932  ;;  %4612 = vmatpush3.msra.mxu1 %v298_v10 }
 0x5d4   :  { %v890_v21 = vmul.f32 %v4933_v17, %v4929_v8  ;;  %4621 = vmatprep.subr.mxu1 %v5169_v13 }
 0x5d6   :  { %4609 = vmatmul.mubr.msk.f32.vlgmr.msra.gmra.mrb[8].mxu0 %vm304_vm2, %v890_v21 }
 0x5d7   :  { %4617 = vmatpush3.xpose.msk.msra.mxu0 %vm304_vm2, %v1129_v20  ;;  %4618 = vmatprep.mubr.msk.f32.mxu0 %vm5170_vm1, %v5169_v13 }
 0x5d8   :  { %4626 = vmatprep.subr.mxu0 %v5169_v13 }
 0x5da   :  { %4619 = vmatmul.mubr.msk.f32.vlgmr.msra.gmra.mrb[10].mxu0 %vm304_vm2, %v1127_v22 }
 0x5db   :  { %4628 = vmatprep.mubr.msk.f32.mxu0 %vm5170_vm1, %v5169_v13 }
 0x6a5   :  { %v963_v23 = vpop.f32.mrb[8].mxu1 }
 0x6a6   :  { %v4605_v24 = vpop.f32.mrb[9].mxu1  ;;  %4613 = vmatprep.mubr.msk.f32.mxu1 %vm304_vm2, %v963_v23 }
 0x6a9   :  { %v1039_v26 = vpop.f32.mrb[8].mxu0 }
 0x6aa   :  { %v4610_v27 = vpop.f32.mrb[9].mxu0  ;;  %4614 = vmatmul.mubr.msk.f32.vlgmr.msra.gmra.mrb[0].mxu1 %vm304_vm2, %v1039_v26 }
 0x6ab   :  { %4622 = vmatpush3.xpose.msk.msra.mxu1 %vm304_vm2, %v1207_v25  ;;  %4623 = vmatprep.mubr.msk.f32.mxu1 %vm5170_vm1, %v5169_v13  ;;  %v300_v25 = vld [vmem:[#allocation7 + $0x18] sm:$0xff] }
 0x6ac   :  { %4631 = vmatprep.subr.mxu1 %v5169_v13 }
 0x6ad   :  { %v1200_v29 = vpop.f32.mrb[10].mxu0 }
 0x6ae   :  { %v4620_v30 = vpop.f32.mrb[11].mxu0  ;;  %4624 = vmatmul.mubr.msk.f32.vlgmr.msra.gmra.mrb[10].mxu1 %vm304_vm2, %v1205_v28  ;;  %v1282_v31 = vsel %vm304_vm2, %v1200_v29, -inf }
 0x6af   :  { %1283 = vmax.xlane.f32.xlu1 %v1282_v31  ;;  %4633 = vmatprep.mubr.msk.f32.mxu1 %vm5170_vm1, %v5169_v13  ;;  %v1974_v30 = vld [vmem:[#allocation10] sm:$0xff]  ;;  %v1975_v31 = vld [vmem:[#allocation10 + $0x8] sm:$0xff] }
 0x6c0   :  { %1541 = vrot.lane.b32.xlu1 %v5368_v18, %s5178_s21 }
 0x6c4   :  { %1539 = vrot.lane.b32.xlu1 %v5368_v18, %s5179_s4 }
 0x6c8   :  { %1617 = vrot.lane.b32.xlu1 %v5372_v19, %s5179_s4 }
 0x73c   :  { %v1284_v32 = vpop.xlane.xlu1 %1283 }
 0x73d   :  { %v1288_v33 = vsub.f32 %v1200_v29, %v1284_v32  ;;  %v4837_v32 = vpack.c.bf16 %v1975_v31, %v1974_v30 }
 0x73f   :  { %v1290_v34 = vmul.f32 1.442695, %v1288_v33  ;;  %v4317_v33 = vld [vmem:[%s5760_s5] ss:$0 sm:$0xff] }
 0x740   :  { %v1542_v42 = vpop.permute.xlu1 %1541 }
 0x741   :  { %4934 = vpow2.f32 %v1290_v34 }
 0x744   :  { %v1540_v45 = vpop.permute.xlu1 %1539 }
 0x748   :  { %v1618_v46 = vpop.permute.xlu1 %1617 }
 0x74b   :  { %v4935_v35 = vpop.eup %4934 }
 0x74c   :  { %v1294_v36 = vsel %vm304_vm2, %v4935_v35, 0.0 }
 0x74d   :  { %1295 = vadd.xlane.f32.xlu0 %v1294_v36 }
 0x763   :  { %1304 = vrot.lane.b32.xlu0 %v5368_v18, %s5180_s16 }
 0x767   :  { %1619 = vrot.lane.b32.xlu0 %v5372_v19, %s5178_s21 }
 0x781   :  { %v1278_v37 = vpop.f32.mrb[10].mxu1 }
 0x782   :  { %v4625_v38 = vpop.f32.mrb[11].mxu1  ;;  %v1285_v39 = vsel %vm304_vm2, %v1278_v37, -inf }
 0x786   :  { %1286 = vmax.xlane.f32.xlu0 %v1285_v39 }
 0x79c   :  { %1380 = vrot.lane.b32.xlu0 %v5372_v19, %s5180_s16 }
 0x7a0   :  { %1717 = vrot.lane.b32.xlu0 %v5368_v18, %s5181_s22 }
 0x7da   :  { %v1296_v40 = vpop.xlane.xlu0 %1295 }
 0x7db   :  { %4936 = vrcp.f32 %v1296_v40 }
 0x7de   :  { %v1305_v41 = vpop.permute.xlu0 %1304 }
 0x7df   :  { %4627 = vmatpush3.msra.mxu0 %v1305_v41 }
 0x7e0   :  { %4641 = vmatprep.subr.mxu0 %v5169_v13 }
 0x7e2   :  { %v1620_v18 = vpop.permute.xlu0 %1619 }
 0x7e5   :  { %v4937_v43 = vpop.eup %4936 }
 0x7e6   :  { %v1302_v44 = vmul.f32 %v4937_v43, %v4935_v35  ;;  %v1976_v43 = vld [vmem:[#allocation10 + $0x10] sm:$0xff] }
 0x7e8   :  { %4629 = vmatmul.mubr.msk.f32.vlgmr.msra.gmra.mrb[12].mxu0 %vm304_vm2, %v1302_v44  ;;  %v1977_v44 = vld [vmem:[#allocation10 + $0x18] sm:$0xff] }
 0x7e9   :  { %4642 = vmatpush3.xpose.msk.msra.mxu0 %vm304_vm2, %v1542_v42  ;;  %4643 = vmatprep.mubr.msk.f32.mxu0 %vm5170_vm1, %v5169_v13 }
 0x7ea   :  { %4646 = vmatprep.subr.mxu0 %v5169_v13 }
 0x7ec   :  { %4644 = vmatmul.mubr.msk.f32.vlgmr.msra.gmra.mrb[14].mxu0 %vm304_vm2, %v1540_v45  ;;  %v4841_v45 = vpack.c.bf16 %v1977_v44, %v1976_v43 }
 0x7ed   :  { %4647 = vmatpush3.xpose.msk.msra.mxu0 %vm304_vm2, %v1620_v18  ;;  %4648 = vmatprep.mubr.msk.f32.mxu0 %vm5170_vm1, %v5169_v13 }
 0x7ee   :  { %4656 = vmatprep.subr.mxu0 %v5169_v13 }
 0x7f0   :  { %4649 = vmatmul.mubr.msk.f32.vlgmr.msra.gmra.mrb[16].mxu0 %vm304_vm2, %v1618_v46 }
 0x7f1   :  { %4658 = vmatprep.mubr.msk.f32.mxu0 %vm5170_vm1, %v5169_v13 }
 0x813   :  { %v1287_v47 = vpop.xlane.xlu0 %1286 }
 0x814   :  { %v1289_v48 = vsub.f32 %v1278_v37, %v1287_v47 }
 0x816   :  { %v1292_v49 = vmul.f32 1.442695, %v1289_v48 }
 0x817   :  { %v1381_v50 = vpop.permute.xlu0 %1380 }
 0x818   :  { %4938 = vpow2.f32 %v1292_v49  ;;  %4632 = vmatpush3.msra.mxu1 %v1381_v50 }
 0x819   :  { %4636 = vmatprep.subr.mxu1 %v299_v0 }
 0x81b   :  { %v1718_v15 = vpop.permute.xlu0 %1717 }
 0x822   :  { %v4939_v51 = vpop.eup %4938 }
 0x823   :  { %v1297_v52 = vsel %vm304_vm2, %v4939_v51, 0.0 }
 0x824   :  { %1298 = vadd.xlane.f32.xlu1 %v1297_v52  ;;  %v4354_v52 = vld [vmem:[%s5762_s7] ss:$0 sm:$0xff] }
 0x8b1   :  { %v1299_v53 = vpop.xlane.xlu1 %1298 }
 0x8b2   :  { %4940 = vrcp.f32 %v1299_v53 }
 0x8bb   :  { %v1376_v54 = vpop.f32.mrb[12].mxu0 }
 0x8bc   :  { %v4941_v55 = vpop.eup %4940  ;;  %v4630_v56 = vpop.f32.mrb[13].mxu0 }
 0x8bd   :  { %v1303_v57 = vmul.f32 %v4941_v55, %v4939_v51 }
 0x8bf   :  { %4634 = vmatmul.mubr.msk.f32.vlgmr.msra.gmra.mrb[12].mxu1 %vm304_vm2, %v1303_v57  ;;  %v1613_v58 = vpop.f32.mrb[14].mxu0 }
 0x8c0   :  { %4638 = vmatprep.mubr.msk.f32.mxu1 %vm304_vm2, %v1376_v54  ;;  %v4645_v59 = vpop.f32.mrb[15].mxu0  ;;  %v1695_v60 = vsel %vm304_vm2, %v1613_v58, -inf  ;;  %4637 = vmatpush3.msra.mxu1 %v299_v0 }
 0x8c1   :  { %1696 = vmax.xlane.f32.xlu1 %v1695_v60  ;;  %4651 = vmatprep.subr.mxu1 %v5169_v13 }
 0x8c3   :  { %v1691_v61 = vpop.f32.mrb[16].mxu0 }
 0x8c4   :  { %v4650_v62 = vpop.f32.mrb[17].mxu0  ;;  %v1698_v63 = vsel %vm304_vm2, %v1691_v61, -inf }
 0x8c5   :  { %1699 = vmax.xlane.f32.xlu1 %v1698_v63 }
 0x94e   :  { %v1697_v1 = vpop.xlane.xlu1 %1696 }
 0x94f   :  { %v1701_v2 = vsub.f32 %v1613_v58, %v1697_v1 }
 0x951   :  { %v1703_v3 = vmul.f32 1.442695, %v1701_v2 }
 0x952   :  { %v1700_v4 = vpop.xlane.xlu1 %1699 }
 0x953   :  { %4942 = vpow2.f32 %v1703_v3  ;;  %v1702_v6 = vsub.f32 %v1691_v61, %v1700_v4 }
 0x955   :  { %v1705_v8 = vmul.f32 1.442695, %v1702_v6  ;;  %v2128_v6 = vld [vmem:[#allocation5 + $0x20] sm:$0xff] }
 0x957   :  { %4944 = vpow2.f32 %v1705_v8  ;;  %v2129_v8 = vld [vmem:[#allocation5 + $0x28] sm:$0xff] }
 0x95d   :  { %v4943_v9 = vpop.eup %4942 }
 0x95e   :  { %v1707_v10 = vsel %vm304_vm2, %v4943_v9, 0.0 }
 0x95f   :  { %1708 = vadd.xlane.f32.xlu1 %v1707_v10  ;;  %v4845_v10 = vpack.c.bf16 %v2129_v8, %v2128_v6  ;;  %v2310_v8 = vld [vmem:[#allocation7 + $0x20] sm:$0xff] }
 0x961   :  { %v4945_v11 = vpop.eup %4944 }
 0x962   :  { %v1710_v12 = vsel %vm304_vm2, %v4945_v11, 0.0 }
 0x963   :  { %1711 = vadd.xlane.f32.xlu1 %v1710_v12  ;;  %v2130_v12 = vld [vmem:[#allocation5 + $0x30] sm:$0xff] }
 0x974   :  { %1793 = vrot.lane.b32.xlu1 %v5372_v19, %s5181_s22 }
 0x992   :  { %v1452_v14 = vpop.f32.mrb[12].mxu1 }
 0x993   :  { %v4635_v16 = vpop.f32.mrb[13].mxu1  ;;  %4639 = vmatmul.mubr.msk.f32.vlgmr.msra.gmra.mrb[0].mxu1 %vm304_vm2, %v1452_v14  ;;  %v2131_v14 = vld [vmem:[#allocation5 + $0x38] sm:$0xff] }
 0x994   :  { %4652 = vmatpush3.msra.mxu1 %v1718_v15  ;;  %4653 = vmatprep.mubr.msk.f32.mxu1 %vm5170_vm1, %v5169_v13  ;;  %v4849_v16 = vpack.c.bf16 %v2131_v14, %v2130_v12 }
 0x995   :  { %4661 = vmatprep.subr.mxu1 %v300_v25 }
 0x9ec   :  { %v1709_v17 = vpop.xlane.xlu1 %1708 }
 0x9ed   :  { %4946 = vrcp.f32 %v1709_v17  ;;  %v2224_v17 = vld [vmem:[#allocation8 + $0x30] sm:$0xff] }
 0x9f0   :  { %v1712_v20 = vpop.xlane.xlu1 %1711 }
 0x9f1   :  { %4948 = vrcp.f32 %v1712_v20  ;;  %v2225_v20 = vld [vmem:[#allocation8 + $0x38] sm:$0xff] }
 0x9f4   :  { %v1794_v21 = vpop.permute.xlu1 %1793 }
 0x9f5   :  { %4657 = vmatpush3.msra.mxu0 %v1794_v21  ;;  %v4857_v21 = vpack.c.bf16 %v2225_v20, %v2224_v17 }
 0x9f6   :  { %4838 = vmatprep.subr.bf16.mxu0 %v4837_v32 }
 0x9f7   :  { %v4947_v22 = vpop.eup %4946 }
 0x9f8   :  { %v1715_v23 = vmul.f32 %v4947_v22, %v4943_v9  ;;  %v2222_v9 = vld [vmem:[#allocation8 + $0x20] sm:$0xff] }
 0x9fa   :  { %4654 = vmatmul.mubr.msk.f32.vlgmr.msra.gmra.mrb[14].mxu1 %vm304_vm2, %v1715_v23 }
 0x9fb   :  { %v4949_v19 = vpop.eup %4948  ;;  %4662 = vmatpush3.msra.mxu1 %v300_v25 }
 0x9fc   :  { %v1716_v24 = vmul.f32 %v4949_v19, %v4945_v11  ;;  %v2223_v11 = vld [vmem:[#allocation8 + $0x28] sm:$0xff]  ;;  %4846 = vmatprep.subr.bf16.mxu1 %v4845_v10 }
 0x9fd   :  { %v4853_v15 = vpack.c.bf16 %v2223_v11, %v2222_v9 }
 0x9fe   :  { %4659 = vmatmul.mubr.msk.f32.vlgmr.msra.gmra.mrb[18].mxu0 %vm304_vm2, %v1716_v24 }
 0x9ff   :  { %4840 = vmatpush3.bf16.msra.mxu0 %v4837_v32 }
 0xa00   :  { %4842 = vmatprep.subr.bf16.mxu0 %v4841_v45 }
 0xa03   :  { %4844 = vmatpush3.bf16.msra.mxu0 %v4841_v45 }
 0xa04   :  { %4854 = vmatprep.subr.bf16.mxu0 %v4853_v15 }
 0xacd   :  { %v1789_v26 = vpop.f32.mrb[14].mxu1 }
 0xace   :  { %v4655_v27 = vpop.f32.mrb[15].mxu1  ;;  %4663 = vmatprep.mubr.msk.f32.mxu1 %vm304_vm2, %v1789_v26 }
 0xad1   :  { %v1865_v28 = vpop.f32.mrb[18].mxu0 }
 0xad2   :  { %v4660_v29 = vpop.f32.mrb[19].mxu0  ;;  %4664 = vmatmul.mubr.msk.f32.vlgmr.msra.gmra.mrb[0].mxu1 %vm304_vm2, %v1865_v28 }
 0xad3   :  { %4848 = vmatpush3.bf16.msra.mxu1 %v4845_v10 }
 0xad4   :  { %4850 = vmatprep.subr.bf16.mxu1 %v4849_v16 }
 0xad7   :  { %4852 = vmatpush3.bf16.msra.mxu1 %v4849_v16 }
 0xad8   :  { %4699 = vmatprep.subr.mxu1 %v5169_v13 }
 0xba5   :  { %v4665_v34 = vpop.f32.mrb[0].mxu1 }
 0xba6   :  { %v4877_v35 = vadd.f32 %v4665_v34, %v4317_v33  ;;  %v1941_v36 = vpop.f32.mrb[1].mxu1 }
 0xba7   :  { %v4878_v37 = vadd.f32 %v4317_v33, %v1941_v36 }
 0xba8   :  { %v4353_v38 = vmul.f32 -1.442695, %v4877_v35 }
 0xba9   :  { %v4352_v39 = vmul.f32 -1.442695, %v4878_v37 }
 0xbaa   :  { %4950 = vpow2.f32 %v4353_v38  ;;  %v4357_v38 = vld [vmem:[%s5763_s8] ss:$0 sm:$0xff] }
 0xbab   :  { %4952 = vpow2.f32 %v4352_v39 }
 0xbb4   :  { %v4951_v40 = vpop.eup %4950 }
 0xbb5   :  { %v4953_v41 = vpop.eup %4952  ;;  %v1959_v18 = vadd.f32 1.0, %v4951_v40  ;;  %v4358_v40 = vld [vmem:[%s5764_s9] ss:$0 sm:$0xff] }
 0xbb6   :  { %v1958_v42 = vadd.f32 1.0, %v4953_v41 }
 0xbb8   :  { %4954 = vrcp.f32 %v1958_v42 }
 0xbb9   :  { %4956 = vrcp.f32 %v1959_v18 }
 0xbc2   :  { %v4955_v46 = vpop.eup %4954 }
 0xbc3   :  { %1966 = vrot.lane.b32.xlu0 %v4955_v46, %s5171_s15  ;;  %v4957_v47 = vpop.eup %4956 }
 0xbc7   :  { %1968 = vrot.lane.b32.xlu0 %v4957_v47, %s5171_s15 }
 0xc35   :  { %v1967_v48 = vpop.permute.xlu0 %1966 }
 0xc36   :  { %v1972_v49 = vmul.f32 %v4878_v37, %v1967_v48 }
 0xc38   :  { %4674 = vmatprep.mubr.msk.f32.mxu0 %vm129_vm0, %v1972_v49 }
 0xc39   :  { %v1969_v50 = vpop.permute.xlu0 %1968 }
 0xc3a   :  { %v1973_v51 = vmul.f32 %v4877_v35, %v1969_v50 }
 0xc3c   :  { %4675 = vmatmul.mubr.msk.f32.vlgmr.msra.gmra.mrb[20].mxu0 %vm129_vm0, %v1973_v51 }
 0xc3d   :  { %4856 = vmatpush3.bf16.msra.mxu0 %v4853_v15 }
 0xc3e   :  { %4858 = vmatprep.subr.bf16.mxu0 %v4857_v21 }
 0xc41   :  { %4860 = vmatpush3.bf16.msra.mxu0 %v4857_v21 }
 0xc42   :  { %4709 = vmatprep.subr.mxu0 %v5169_v13 }
 0xd0f   :  { %v4676_v53 = vpop.f32.mrb[20].mxu0 }
 0xd10   :  { %v2063_v54 = vadd.f32 %v4676_v53, %v4354_v52  ;;  %v2057_v55 = vpop.f32.mrb[21].mxu0 }
 0xd11   :  { %v2058_v56 = vadd.f32 %v4354_v52, %v2057_v55 }
 0xd12   :  { %v2071_v57 = vsel %vm129_vm0, %v2063_v54, 0.0 }
 0xd13   :  { %2072 = vadd.xlane.f32.xlu1 %v2071_v57  ;;  %v2068_v58 = vsel %vm129_vm0, %v2058_v56, 0.0 }
 0xd14   :  { %2069 = vadd.xlane.f32.xlu0 %v2068_v58 }
 0xda0   :  { %v2073_v59 = vpop.xlane.xlu1 %2072 }
 0xda1   :  { %v2076_v60 = vmul.f32 0.03125, %v2073_v59  ;;  %v2070_v61 = vpop.xlane.xlu0 %2069 }
 0xda2   :  { %v2075_v62 = vmul.f32 0.03125, %v2070_v61 }
 0xda3   :  { %v2078_v63 = vsub.f32 %v2063_v54, %v2076_v60 }
 0xda4   :  { %v2077_v0 = vsub.f32 %v2058_v56, %v2075_v62 }
 0xda5   :  { %v2080_v3 = vmul.f32 %v2078_v63, %v2078_v63 }
 0xda6   :  { %v2079_v1 = vmul.f32 %v2077_v0, %v2077_v0 }
 0xda7   :  { %v2084_v4 = vsel %vm129_vm0, %v2080_v3, 0.0 }
 0xda8   :  { %v2081_v2 = vsel %vm129_vm0, %v2079_v1, 0.0 }
 0xda9   :  { %2082 = vadd.xlane.f32.xlu0 %v2081_v2 }
 0xdad   :  { %2085 = vadd.xlane.f32.xlu0 %v2084_v4 }
 0xe36   :  { %v2083_v22 = vpop.xlane.xlu0 %2082 }
 0xe37   :  { %v2087_v23 = vmul.f32 0.032258064, %v2083_v22 }
 0xe39   :  { %4958 = vrsqrt.f32 %v2087_v23  ;;  %vm2091_vm3 = vcmp.eq.f32.partialorder %v2087_v23, inf  ;;  %v2094_v27 = vand.u32 2147483648, %v2087_v23  ;;  %vm2093_vm4 = vcmp.eq.f32.partialorder %v2087_v23, 0.0 }
 0xe3a   :  { %v2086_v19 = vpop.xlane.xlu0 %2085 }
 0xe3b   :  { %v2088_v24 = vmul.f32 0.032258064, %v2086_v19 }
 0xe3d   :  { %4960 = vrsqrt.f32 %v2088_v24  ;;  %vm2098_vm5 = vcmp.eq.f32.partialorder %v2088_v24, inf  ;;  %v2101_v33 = vand.u32 2147483648, %v2088_v24  ;;  %vm2100_vm6 = vcmp.eq.f32.partialorder %v2088_v24, 0.0 }
 0xe43   :  { %v4959_v25 = vpop.eup %4958 }
 0xe44   :  { %v2090_v26 = vmul.f32 %v4959_v25, %v2087_v23 }
 0xe46   :  { %v2092_v28 = vsel %vm2091_vm3, %v2087_v23, %v2090_v26 }
 0xe47   :  { %v4961_v29 = vpop.eup %4960  ;;  %v2095_v30 = vsel %vm2093_vm4, %v2094_v27, %v2092_v28 }
 0xe48   :  { %v2103_v31 = vadd.f32 1e-06, %v2095_v30  ;;  %v2097_v32 = vmul.f32 %v4961_v29, %v2088_v24 }
 0xe4a   :  { %4962 = vrcp.f32 %v2103_v31  ;;  %v2099_v34 = vsel %vm2098_vm5, %v2088_v24, %v2097_v32 }
 0xe4b   :  { %v2102_v35 = vsel %vm2100_vm6, %v2101_v33, %v2099_v34 }
 0xe4c   :  { %v2104_v36 = vadd.f32 1e-06, %v2102_v35 }
 0xe4e   :  { %4964 = vrcp.f32 %v2104_v36 }
 0xe54   :  { %v4963_v37 = vpop.eup %4962 }
 0xe55   :  { %v2107_v39 = vmul.f32 %v4963_v37, %v2077_v0 }
 0xe57   :  { %v2115_v41 = vmul.f32 %v4357_v38, %v2107_v39 }
 0xe58   :  { %v4965_v42 = vpop.eup %4964 }
 0xe59   :  { %v2108_v43 = vmul.f32 %v4965_v42, %v2078_v63  ;;  %v2123_v44 = vadd.f32 %v4358_v40, %v2115_v41 }
 0xe5b   :  { %v2116_v45 = vmul.f32 %v4357_v38, %v2108_v43  ;;  %v5531_v18 = vadd.f32 %v2123_v44, %v5347_v5  ;;  %v4360_v5 = vld [vmem:[%s5757_s2 + $0x1] ss:$0 sm:$0xff] }
 0xe5d   :  { %v2124_v46 = vadd.f32 %v4358_v40, %v2116_v45  ;;  %4685 = vmatprep.mubr.msk.f32.mxu1 %vm129_vm0, %v5531_v18  ;;  %4696 = vmatprep.mubr.msk.f32.mxu0 %vm129_vm0, %v5531_v18 }
 0xe5f   :  { %v5538_v47 = vadd.f32 %v2124_v46, %v5353_v7 }
 0xe61   :  { %4686 = vmatmul.mubr.msk.f32.vlgmr.msra.gmra.mrb[16].mxu1 %vm129_vm0, %v5538_v47  ;;  %4697 = vmatmul.mubr.msk.f32.vlgmr.msra.gmra.mrb[22].mxu0 %vm129_vm0, %v5538_v47 }
 0xe62   :  { %4701 = vmatprep.mubr.msk.f32.mxu1 %vm5170_vm1, %v5169_v13  ;;  %4711 = vmatprep.mubr.msk.f32.mxu0 %vm5170_vm1, %v5169_v13 }
 0xf34   :  { %v4687_v48 = vpop.f32.mrb[16].mxu1 }
 0xf35   :  { %v5551_v49 = vadd.f32 %v4687_v48, %v4360_v5  ;;  %v2212_v7 = vpop.f32.mrb[17].mxu1 }
 0xf36   :  { %v5553_v50 = vadd.f32 %v4360_v5, %v2212_v7 }
 0xf37   :  { %2392 = vrot.lane.b32.xlu1 %v5551_v49, %s5171_s15 }
 0xf38   :  { %2315 = vrot.lane.b32.xlu0 %v5553_v50, %s5171_s15 }
 0xfa9   :  { %v2393_v52 = vpop.permute.xlu1 %2392 }
 0xfaa   :  { %v2316_v51 = vpop.permute.xlu0 %2315 }
 0xfab   :  { %4700 = vmatpush3.xpose.msk.msra.mxu1 %vm304_vm2, %v2316_v51 }
 0xfac   :  { %4704 = vmatprep.subr.mxu1 %v5169_v13 }
 0xfae   :  { %4702 = vmatmul.mubr.msk.f32.vlgmr.msra.gmra.mrb[18].mxu1 %vm304_vm2, %v5553_v50 }
 0xfaf   :  { %4705 = vmatpush3.xpose.msk.msra.mxu1 %vm304_vm2, %v2393_v52  ;;  %4706 = vmatprep.mubr.msk.f32.mxu1 %vm5170_vm1, %v5169_v13 }
 0xfb0   :  { %4714 = vmatprep.subr.mxu1 %v5169_v13 }
 0xfb2   :  { %4707 = vmatmul.mubr.msk.f32.vlgmr.msra.gmra.mrb[20].mxu1 %vm304_vm2, %v5551_v49 }
 0xfb3   :  { %4716 = vmatprep.mubr.msk.f32.mxu1 %vm5170_vm1, %v5169_v13 }
0x1081   :  { %v2387_v53 = vpop.f32.mrb[18].mxu1 }
0x1082   :  { %v4703_v54 = vpop.f32.mrb[19].mxu1  ;;  %v2468_v55 = vsel %vm304_vm2, %v2387_v53, -inf }
0x1083   :  { %2469 = vmax.xlane.f32.xlu1 %v2468_v55 }
0x1085   :  { %v2464_v56 = vpop.f32.mrb[20].mxu1 }
0x1086   :  { %v4708_v57 = vpop.f32.mrb[21].mxu1  ;;  %v2471_v58 = vsel %vm304_vm2, %v2464_v56, -inf }
0x1087   :  { %2472 = vmax.xlane.f32.xlu0 %v2471_v58 }
0x1110   :  { %v2470_v59 = vpop.xlane.xlu1 %2469 }
0x1111   :  { %v2474_v60 = vsub.f32 %v2387_v53, %v2470_v59 }
0x1113   :  { %v2476_v61 = vmul.f32 1.442695, %v2474_v60 }
0x1114   :  { %v2473_v62 = vpop.xlane.xlu0 %2472 }
0x1115   :  { %4966 = vpow2.f32 %v2476_v61  ;;  %v2475_v63 = vsub.f32 %v2464_v56, %v2473_v62 }
0x1117   :  { %v2478_v0 = vmul.f32 1.442695, %v2475_v63  ;;  %v2311_v63 = vld [vmem:[#allocation7 + $0x28] sm:$0xff] }
0x1119   :  { %4968 = vpow2.f32 %v2478_v0 }
0x111f   :  { %v4967_v1 = vpop.eup %4966 }
0x1120   :  { %v2480_v2 = vsel %vm304_vm2, %v4967_v1, 0.0 }
0x1121   :  { %2481 = vadd.xlane.f32.xlu0 %v2480_v2 }
0x1123   :  { %v4969_v3 = vpop.eup %4968 }
0x1124   :  { %v2483_v4 = vsel %vm304_vm2, %v4969_v3, 0.0 }
0x1125   :  { %2484 = vadd.xlane.f32.xlu1 %v2483_v4 }
0x1136   :  { %2566 = vrot.lane.b32.xlu1 %v5551_v49, %s5172_s17 }
0x1137   :  { %2490 = vrot.lane.b32.xlu0 %v5553_v50, %s5172_s17 }
0x113a   :  { %2727 = vrot.lane.b32.xlu1 %v5553_v50, %s5174_s0 }
0x113b   :  { %2725 = vrot.lane.b32.xlu0 %v5553_v50, %s5173_s18 }
0x113e   :  { %2805 = vrot.lane.b32.xlu1 %v5551_v49, %s5174_s0 }
0x113f   :  { %2803 = vrot.lane.b32.xlu0 %v5551_v49, %s5173_s18 }
0x11ae   :  { %v2482_v6 = vpop.xlane.xlu0 %2481 }
0x11af   :  { %4970 = vrcp.f32 %v2482_v6 }
0x11b2   :  { %v2485_v9 = vpop.xlane.xlu1 %2484  ;;  %v2491_v10 = vpop.permute.xlu0 %2490 }
0x11b3   :  { %4972 = vrcp.f32 %v2485_v9  ;;  %4710 = vmatpush3.msra.mxu0 %v2491_v10 }
0x11b4   :  { %4719 = vmatprep.subr.mxu0 %v2310_v8 }
0x11b6   :  { %v2567_v11 = vpop.permute.xlu1 %2566  ;;  %v2726_v20 = vpop.permute.xlu0 %2725 }
0x11b7   :  { %4715 = vmatpush3.msra.mxu1 %v2567_v11 }
0x11b8   :  { %4724 = vmatprep.subr.mxu1 %v5169_v13 }
0x11b9   :  { %v4971_v12 = vpop.eup %4970 }
0x11ba   :  { %v2488_v14 = vmul.f32 %v4971_v12, %v4967_v1  ;;  %v2728_v17 = vpop.permute.xlu1 %2727  ;;  %v2804_v25 = vpop.permute.xlu0 %2803 }
0x11bc   :  { %4712 = vmatmul.mubr.msk.f32.vlgmr.msra.gmra.mrb[24].mxu0 %vm304_vm2, %v2488_v14  ;;  %v2312_v14 = vld [vmem:[#allocation7 + $0x30] sm:$0xff] }
0x11bd   :  { %v4973_v15 = vpop.eup %4972  ;;  %4720 = vmatpush3.msra.mxu0 %v2310_v8 }
0x11be   :  { %v2489_v16 = vmul.f32 %v4973_v15, %v4969_v3  ;;  %4729 = vmatprep.subr.mxu0 %v5169_v13  ;;  %v2806_v19 = vpop.permute.xlu1 %2805 }
0x11c0   :  { %4717 = vmatmul.mubr.msk.f32.vlgmr.msra.gmra.mrb[22].mxu1 %vm304_vm2, %v2489_v16 }
0x11c1   :  { %4725 = vmatpush3.xpose.msk.msra.mxu1 %vm304_vm2, %v2728_v17  ;;  %4726 = vmatprep.mubr.msk.f32.mxu1 %vm5170_vm1, %v5169_v13 }
0x11c2   :  { %4734 = vmatprep.subr.mxu1 %v5169_v13 }
0x11c4   :  { %4727 = vmatmul.mubr.msk.f32.vlgmr.msra.gmra.mrb[24].mxu1 %vm304_vm2, %v2726_v20 }
0x11c5   :  { %4736 = vmatprep.mubr.msk.f32.mxu1 %vm5170_vm1, %v5169_v13 }
0x128f   :  { %v2562_v21 = vpop.f32.mrb[24].mxu0 }
0x1290   :  { %v4713_v22 = vpop.f32.mrb[25].mxu0  ;;  %4721 = vmatprep.mubr.msk.f32.mxu0 %vm304_vm2, %v2562_v21 }
0x1293   :  { %v2638_v23 = vpop.f32.mrb[22].mxu1 }
0x1294   :  { %v4718_v24 = vpop.f32.mrb[23].mxu1  ;;  %4722 = vmatmul.mubr.msk.f32.vlgmr.msra.gmra.mrb[22].mxu0 %vm304_vm2, %v2638_v23 }
0x1295   :  { %4730 = vmatpush3.xpose.msk.msra.mxu0 %vm304_vm2, %v2806_v19  ;;  %4731 = vmatprep.mubr.msk.f32.mxu0 %vm5170_vm1, %v5169_v13 }
0x1296   :  { %4739 = vmatprep.subr.mxu0 %v5169_v13 }
0x1297   :  { %v2799_v26 = vpop.f32.mrb[24].mxu1 }
0x1298   :  { %v4728_v27 = vpop.f32.mrb[25].mxu1  ;;  %4732 = vmatmul.mubr.msk.f32.vlgmr.msra.gmra.mrb[26].mxu0 %vm304_vm2, %v2804_v25  ;;  %v2881_v28 = vsel %vm304_vm2, %v2799_v26, -inf }
0x1299   :  { %2882 = vmax.xlane.f32.xlu1 %v2881_v28  ;;  %4741 = vmatprep.mubr.msk.f32.mxu0 %vm5170_vm1, %v5169_v13 }
0x12aa   :  { %3140 = vrot.lane.b32.xlu1 %v5553_v50, %s5176_s19 }
0x12ae   :  { %3138 = vrot.lane.b32.xlu1 %v5553_v50, %s5177_s20 }
0x12b2   :  { %3216 = vrot.lane.b32.xlu1 %v5551_v49, %s5177_s20 }
0x1326   :  { %v2883_v29 = vpop.xlane.xlu1 %2882 }
0x1327   :  { %v2887_v30 = vsub.f32 %v2799_v26, %v2883_v29 }
0x1329   :  { %v2889_v31 = vmul.f32 1.442695, %v2887_v30 }
0x132a   :  { %v3141_v39 = vpop.permute.xlu1 %3140 }
0x132b   :  { %4974 = vpow2.f32 %v2889_v31 }
0x132e   :  { %v3139_v42 = vpop.permute.xlu1 %3138 }
0x1332   :  { %v3217_v44 = vpop.permute.xlu1 %3216 }
0x1335   :  { %v4975_v32 = vpop.eup %4974 }
0x1336   :  { %v2893_v33 = vsel %vm304_vm2, %v4975_v32, 0.0 }
0x1337   :  { %2894 = vadd.xlane.f32.xlu0 %v2893_v33 }
0x134d   :  { %2903 = vrot.lane.b32.xlu0 %v5553_v50, %s5175_s24 }
0x1351   :  { %3218 = vrot.lane.b32.xlu0 %v5551_v49, %s5176_s19 }
0x136b   :  { %v2877_v34 = vpop.f32.mrb[26].mxu0 }
0x136c   :  { %v4733_v35 = vpop.f32.mrb[27].mxu0  ;;  %v2884_v36 = vsel %vm304_vm2, %v2877_v34, -inf }
0x1370   :  { %2885 = vmax.xlane.f32.xlu0 %v2884_v36 }
0x1386   :  { %2979 = vrot.lane.b32.xlu0 %v5551_v49, %s5175_s24 }
0x138a   :  { %3316 = vrot.lane.b32.xlu0 %v5553_v50, %s5180_s16 }
0x138e   :  { %3553 = vrot.lane.b32.xlu0 %v5553_v50, %s5178_s21 }
0x1392   :  { %3631 = vrot.lane.b32.xlu0 %v5551_v49, %s5178_s21 }
0x1396   :  { %3551 = vrot.lane.b32.xlu0 %v5553_v50, %s5179_s4 }
0x139a   :  { %3629 = vrot.lane.b32.xlu0 %v5551_v49, %s5179_s4 }
0x13c4   :  { %v2895_v37 = vpop.xlane.xlu0 %2894 }
0x13c5   :  { %4976 = vrcp.f32 %v2895_v37 }
0x13c8   :  { %v2904_v38 = vpop.permute.xlu0 %2903 }
0x13c9   :  { %4735 = vmatpush3.msra.mxu1 %v2904_v38 }
0x13ca   :  { %4749 = vmatprep.subr.mxu1 %v5169_v13 }
0x13cc   :  { %v3219_v43 = vpop.permute.xlu0 %3218 }
0x13cf   :  { %v4977_v40 = vpop.eup %4976 }
0x13d0   :  { %v2901_v41 = vmul.f32 %v4977_v40, %v4975_v32 }
0x13d2   :  { %4737 = vmatmul.mubr.msk.f32.vlgmr.msra.gmra.mrb[26].mxu1 %vm304_vm2, %v2901_v41 }
0x13d3   :  { %4750 = vmatpush3.xpose.msk.msra.mxu1 %vm304_vm2, %v3141_v39  ;;  %4751 = vmatprep.mubr.msk.f32.mxu1 %vm5170_vm1, %v5169_v13 }
0x13d4   :  { %4754 = vmatprep.subr.mxu1 %v5169_v13 }
0x13d6   :  { %4752 = vmatmul.mubr.msk.f32.vlgmr.msra.gmra.mrb[28].mxu1 %vm304_vm2, %v3139_v42 }
0x13d7   :  { %4755 = vmatpush3.xpose.msk.msra.mxu1 %vm304_vm2, %v3219_v43  ;;  %4756 = vmatprep.mubr.msk.f32.mxu1 %vm5170_vm1, %v5169_v13 }
0x13d8   :  { %4764 = vmatprep.subr.mxu1 %v5169_v13 }
0x13da   :  { %4757 = vmatmul.mubr.msk.f32.vlgmr.msra.gmra.mrb[30].mxu1 %vm304_vm2, %v3217_v44 }
0x13db   :  { %4766 = vmatprep.mubr.msk.f32.mxu1 %vm5170_vm1, %v5169_v13 }
0x13fd   :  { %v2886_v45 = vpop.xlane.xlu0 %2885 }
0x13fe   :  { %v2888_v46 = vsub.f32 %v2877_v34, %v2886_v45 }
0x1400   :  { %v2891_v5 = vmul.f32 1.442695, %v2888_v46 }
0x1401   :  { %v2980_v48 = vpop.permute.xlu0 %2979 }
0x1402   :  { %4978 = vpow2.f32 %v2891_v5  ;;  %4740 = vmatpush3.msra.mxu0 %v2980_v48 }
0x1403   :  { %4744 = vmatprep.subr.mxu0 %v2311_v63 }
0x1405   :  { %v3317_v15 = vpop.permute.xlu0 %3316 }
0x1409   :  { %v3554_v22 = vpop.permute.xlu0 %3553 }
0x140c   :  { %v4979_v7 = vpop.eup %4978 }
0x140d   :  { %v2896_v51 = vsel %vm304_vm2, %v4979_v7, 0.0  ;;  %v3632_v25 = vpop.permute.xlu0 %3631 }
0x140e   :  { %2897 = vadd.xlane.f32.xlu1 %v2896_v51 }
0x1411   :  { %v3552_v27 = vpop.permute.xlu0 %3551 }
0x1415   :  { %v3630_v32 = vpop.permute.xlu0 %3629 }
0x149b   :  { %v2898_v52 = vpop.xlane.xlu1 %2897 }
0x149c   :  { %4980 = vrcp.f32 %v2898_v52 }
0x14a5   :  { %v2975_v53 = vpop.f32.mrb[26].mxu1 }
0x14a6   :  { %v4981_v54 = vpop.eup %4980  ;;  %v4738_v55 = vpop.f32.mrb[27].mxu1 }
0x14a7   :  { %v2902_v56 = vmul.f32 %v4981_v54, %v4979_v7 }
0x14a9   :  { %4742 = vmatmul.mubr.msk.f32.vlgmr.msra.gmra.mrb[28].mxu0 %vm304_vm2, %v2902_v56  ;;  %v3212_v57 = vpop.f32.mrb[28].mxu1 }
0x14aa   :  { %4746 = vmatprep.mubr.msk.f32.mxu0 %vm304_vm2, %v2975_v53  ;;  %v4753_v58 = vpop.f32.mrb[29].mxu1  ;;  %v3294_v59 = vsel %vm304_vm2, %v3212_v57, -inf  ;;  %4745 = vmatpush3.msra.mxu0 %v2311_v63  ;;  %v2313_v53 = vld [vmem:[#allocation7 + $0x38] sm:$0xff]  ;;  %v4364_v63 = vld [vmem:[%s5760_s5 + $0x1] ss:$0 sm:$0xff] }
0x14ab   :  { %3295 = vmax.xlane.f32.xlu1 %v3294_v59  ;;  %4759 = vmatprep.subr.mxu0 %v5169_v13 }
0x14ad   :  { %v3290_v60 = vpop.f32.mrb[30].mxu1 }
0x14ae   :  { %v4758_v61 = vpop.f32.mrb[31].mxu1  ;;  %v3297_v62 = vsel %vm304_vm2, %v3290_v60, -inf }
0x14af   :  { %3298 = vmax.xlane.f32.xlu1 %v3297_v62  ;;  %v3988_v61 = vld [vmem:[#allocation10 + $0x28] sm:$0xff] }
0x1538   :  { %v3296_v0 = vpop.xlane.xlu1 %3295 }
0x1539   :  { %v3300_v1 = vsub.f32 %v3212_v57, %v3296_v0 }
0x153b   :  { %v3302_v2 = vmul.f32 1.442695, %v3300_v1 }
0x153c   :  { %v3299_v3 = vpop.xlane.xlu1 %3298 }
0x153d   :  { %4982 = vpow2.f32 %v3302_v2  ;;  %v3301_v4 = vsub.f32 %v3290_v60, %v3299_v3 }
0x153f   :  { %v3304_v6 = vmul.f32 1.442695, %v3301_v4 }
0x1541   :  { %4984 = vpow2.f32 %v3304_v6 }
0x1547   :  { %v4983_v8 = vpop.eup %4982 }
0x1548   :  { %v3306_v9 = vsel %vm304_vm2, %v4983_v8, 0.0 }
0x1549   :  { %3307 = vadd.xlane.f32.xlu1 %v3306_v9  ;;  %v3990_v9 = vld [vmem:[#allocation10 + $0x38] sm:$0xff] }
0x154b   :  { %v4985_v10 = vpop.eup %4984 }
0x154c   :  { %v3309_v11 = vsel %vm304_vm2, %v4985_v10, 0.0 }
0x154d   :  { %3310 = vadd.xlane.f32.xlu1 %v3309_v11 }
0x155e   :  { %3392 = vrot.lane.b32.xlu1 %v5551_v49, %s5180_s16 }
0x157c   :  { %v3051_v12 = vpop.f32.mrb[28].mxu0 }
0x157d   :  { %v4743_v16 = vpop.f32.mrb[29].mxu0  ;;  %4747 = vmatmul.mubr.msk.f32.vlgmr.msra.gmra.mrb[22].mxu0 %vm304_vm2, %v3051_v12 }
0x157e   :  { %4760 = vmatpush3.msra.mxu0 %v3317_v15  ;;  %4761 = vmatprep.mubr.msk.f32.mxu0 %vm5170_vm1, %v5169_v13 }
0x157f   :  { %4769 = vmatprep.subr.mxu0 %v2312_v14 }
0x15d6   :  { %v3308_v17 = vpop.xlane.xlu1 %3307 }
0x15d7   :  { %4986 = vrcp.f32 %v3308_v17 }
0x15da   :  { %v3311_v20 = vpop.xlane.xlu1 %3310 }
0x15db   :  { %4988 = vrcp.f32 %v3311_v20 }
0x15de   :  { %v3393_v21 = vpop.permute.xlu1 %3392 }
0x15df   :  { %4765 = vmatpush3.msra.mxu1 %v3393_v21 }
0x15e0   :  { %4774 = vmatprep.subr.mxu1 %v5169_v13 }
0x15e1   :  { %v4987_v23 = vpop.eup %4986 }
0x15e2   :  { %v3314_v19 = vmul.f32 %v4987_v23, %v4983_v8  ;;  %v3989_v8 = vld [vmem:[#allocation10 + $0x30] sm:$0xff] }
0x15e3   :  { %v4865_v11 = vpack.c.bf16 %v3990_v9, %v3989_v8 }
0x15e4   :  { %4762 = vmatmul.mubr.msk.f32.vlgmr.msra.gmra.mrb[30].mxu0 %vm304_vm2, %v3314_v19  ;;  %v4402_v19 = vld [vmem:[%s5762_s7 + $0x1] ss:$0 sm:$0xff] }
0x15e5   :  { %v4989_v24 = vpop.eup %4988  ;;  %4770 = vmatpush3.msra.mxu0 %v2312_v14 }
0x15e6   :  { %v3315_v26 = vmul.f32 %v4989_v24, %v4985_v10  ;;  %4779 = vmatprep.subr.mxu0 %v5169_v13 }
0x15e8   :  { %4767 = vmatmul.mubr.msk.f32.vlgmr.msra.gmra.mrb[32].mxu1 %vm304_vm2, %v3315_v26 }
0x15e9   :  { %4775 = vmatpush3.xpose.msk.msra.mxu1 %vm304_vm2, %v3554_v22  ;;  %4776 = vmatprep.mubr.msk.f32.mxu1 %vm5170_vm1, %v5169_v13 }
0x15ea   :  { %4784 = vmatprep.subr.mxu1 %v5169_v13 }
0x15ec   :  { %4777 = vmatmul.mubr.msk.f32.vlgmr.msra.gmra.mrb[34].mxu1 %vm304_vm2, %v3552_v27 }
0x15ed   :  { %4786 = vmatprep.mubr.msk.f32.mxu1 %vm5170_vm1, %v5169_v13 }
0x16b7   :  { %v3388_v28 = vpop.f32.mrb[30].mxu0 }
0x16b8   :  { %v4763_v29 = vpop.f32.mrb[31].mxu0  ;;  %4771 = vmatprep.mubr.msk.f32.mxu0 %vm304_vm2, %v3388_v28 }
0x16bb   :  { %v3464_v30 = vpop.f32.mrb[32].mxu1 }
0x16bc   :  { %v4768_v31 = vpop.f32.mrb[33].mxu1  ;;  %4772 = vmatmul.mubr.msk.f32.vlgmr.msra.gmra.mrb[22].mxu0 %vm304_vm2, %v3464_v30 }
0x16bd   :  { %4780 = vmatpush3.xpose.msk.msra.mxu0 %vm304_vm2, %v3632_v25  ;;  %4781 = vmatprep.mubr.msk.f32.mxu0 %vm5170_vm1, %v5169_v13 }
0x16be   :  { %4789 = vmatprep.subr.mxu0 %v5169_v13 }
0x16bf   :  { %v3625_v33 = vpop.f32.mrb[34].mxu1 }
0x16c0   :  { %v4778_v34 = vpop.f32.mrb[35].mxu1  ;;  %4782 = vmatmul.mubr.msk.f32.vlgmr.msra.gmra.mrb[32].mxu0 %vm304_vm2, %v3630_v32  ;;  %v3707_v35 = vsel %vm304_vm2, %v3625_v33, -inf }
0x16c1   :  { %3708 = vmax.xlane.f32.xlu1 %v3707_v35  ;;  %4791 = vmatprep.mubr.msk.f32.mxu0 %vm5170_vm1, %v5169_v13 }
0x174e   :  { %v3709_v36 = vpop.xlane.xlu1 %3708 }
0x174f   :  { %v3713_v37 = vsub.f32 %v3625_v33, %v3709_v36 }
0x1751   :  { %v3715_v38 = vmul.f32 1.442695, %v3713_v37 }
0x1753   :  { %4990 = vpow2.f32 %v3715_v38 }
0x175d   :  { %v4991_v42 = vpop.eup %4990 }
0x175e   :  { %v3719_v43 = vsel %vm304_vm2, %v4991_v42, 0.0 }
0x1793   :  { %v3703_v39 = vpop.f32.mrb[32].mxu0 }
0x1794   :  { %v4783_v40 = vpop.f32.mrb[33].mxu0  ;;  %v3710_v41 = vsel %vm304_vm2, %v3703_v39, -inf }
0x1795   :  { %3711 = vmax.xlane.f32.xlu0 %v3710_v41 }
0x1799   :  { %3720 = vadd.xlane.f32.xlu0 %v3719_v43 }
0x17af   :  { %3729 = vrot.lane.b32.xlu0 %v5553_v50, %s5181_s22 }
0x1822   :  { %v3712_v44 = vpop.xlane.xlu0 %3711 }
0x1823   :  { %v3714_v45 = vsub.f32 %v3703_v39, %v3712_v44 }
0x1825   :  { %v3717_v46 = vmul.f32 1.442695, %v3714_v45 }
0x1826   :  { %v3721_v13 = vpop.xlane.xlu0 %3720 }
0x1827   :  { %4992 = vpow2.f32 %v3717_v46 }
0x1828   :  { %4994 = vrcp.f32 %v3721_v13 }
0x182a   :  { %v3730_v5 = vpop.permute.xlu0 %3729 }
0x182b   :  { %4785 = vmatpush3.msra.mxu1 %v3730_v5 }
0x1831   :  { %v4993_v48 = vpop.eup %4992 }
0x1832   :  { %v4995_v7 = vpop.eup %4994  ;;  %v3722_v51 = vsel %vm304_vm2, %v4993_v48, 0.0 }
0x1833   :  { %v3727_v52 = vmul.f32 %v4995_v7, %v4991_v42  ;;  %3723 = vadd.xlane.f32.xlu1 %v3722_v51 }
0x1835   :  { %4787 = vmatmul.mubr.msk.f32.vlgmr.msra.gmra.mrb[36].mxu1 %vm304_vm2, %v3727_v52 }
0x1844   :  { %3805 = vrot.lane.b32.xlu1 %v5551_v49, %s5181_s22  ;;  %v3987_v49 = vld [vmem:[#allocation10 + $0x20] sm:$0xff] }
0x1845   :  { %v4861_v62 = vpack.c.bf16 %v3988_v61, %v3987_v49 }
0x1847   :  { %4862 = vmatprep.subr.bf16.mxu1 %v4861_v62 }
0x1848   :  { %4864 = vmatpush3.bf16.msra.mxu1 %v4861_v62 }
0x1849   :  { %4866 = vmatprep.subr.bf16.mxu1 %v4865_v11 }
0x184c   :  { %4868 = vmatpush3.bf16.msra.mxu1 %v4865_v11 }
0x18c0   :  { %v3724_v50 = vpop.xlane.xlu1 %3723 }
0x18c1   :  { %4996 = vrcp.f32 %v3724_v50 }
0x18c4   :  { %v3806_v54 = vpop.permute.xlu1 %3805 }
0x18c5   :  { %4790 = vmatpush3.msra.mxu0 %v3806_v54 }
0x18c6   :  { %4794 = vmatprep.subr.mxu0 %v2313_v53 }
0x18cb   :  { %v4997_v55 = vpop.eup %4996 }
0x18cc   :  { %v3728_v56 = vmul.f32 %v4997_v55, %v4993_v48 }
0x18ce   :  { %4792 = vmatmul.mubr.msk.f32.vlgmr.msra.gmra.mrb[34].mxu0 %vm304_vm2, %v3728_v56  ;;  %v4407_v56 = vld [vmem:[%s5763_s8 + $0x1] ss:$0 sm:$0xff] }
0x18cf   :  { %4795 = vmatpush3.msra.mxu0 %v2313_v53 }
0x1908   :  { %v3801_v57 = vpop.f32.mrb[36].mxu1 }
0x1909   :  { %v4788_v58 = vpop.f32.mrb[37].mxu1  ;;  %4796 = vmatprep.mubr.msk.f32.mxu0 %vm304_vm2, %v3801_v57 }
0x19a1   :  { %v3877_v59 = vpop.f32.mrb[34].mxu0 }
0x19a2   :  { %v4793_v60 = vpop.f32.mrb[35].mxu0  ;;  %4797 = vmatmul.mubr.msk.f32.vlgmr.msra.gmra.mrb[22].mxu0 %vm304_vm2, %v3877_v59  ;;  %v4408_v59 = vld [vmem:[%s5764_s9 + $0x1] ss:$0 sm:$0xff] }
0x1a75   :  { %v4798_v0 = vpop.f32.mrb[22].mxu0 }
0x1a76   :  { %v4879_v1 = vadd.f32 %v4798_v0, %v4364_v63  ;;  %v3953_v2 = vpop.f32.mrb[23].mxu0 }
0x1a77   :  { %v4880_v3 = vadd.f32 %v4364_v63, %v3953_v2 }
0x1a78   :  { %v4400_v4 = vmul.f32 -1.442695, %v4879_v1 }
0x1a79   :  { %v4399_v6 = vmul.f32 -1.442695, %v4880_v3 }
0x1a7a   :  { %4998 = vpow2.f32 %v4400_v4 }
0x1a7b   :  { %5000 = vpow2.f32 %v4399_v6 }
0x1a84   :  { %v4999_v10 = vpop.eup %4998 }
0x1a85   :  { %v5001_v12 = vpop.eup %5000  ;;  %v3971_v14 = vadd.f32 1.0, %v4999_v10 }
0x1a86   :  { %v3970_v15 = vadd.f32 1.0, %v5001_v12 }
0x1a87   :  { %5002 = vrcp.f32 %v3971_v14 }
0x1a88   :  { %5004 = vrcp.f32 %v3970_v15 }
0x1a91   :  { %v5003_v16 = vpop.eup %5002 }
0x1a92   :  { %v5005_v17 = vpop.eup %5004  ;;  %3980 = vrot.lane.b32.xlu0 %v5003_v16, %s5171_s15  ;;  %v4201_v16 = vld [vmem:[%s5767_s12 + $0x8] sm:$0xff] }
0x1a93   :  { %3978 = vrot.lane.b32.xlu1 %v5005_v17, %s5171_s15  ;;  %v4202_v17 = vld [vmem:[%s5767_s12 + $0x10] sm:$0xff] }
0x1b04   :  { %v3981_v20 = vpop.permute.xlu0 %3980 }
0x1b05   :  { %v3979_v21 = vpop.permute.xlu1 %3978  ;;  %v3985_v23 = vmul.f32 %v4879_v1, %v3981_v20 }
0x1b06   :  { %v3984_v22 = vmul.f32 %v4880_v3, %v3979_v21  ;;  %v4203_v21 = vld [vmem:[%s5767_s12 + $0x18] sm:$0xff] }
0x1b08   :  { %4807 = vmatprep.mubr.msk.f32.mxu1 %vm129_vm0, %v3984_v22  ;;  %v4873_v22 = vpack.c.bf16 %v4203_v21, %v4202_v17 }
0x1b09   :  { %4808 = vmatmul.mubr.msk.f32.vlgmr.msra.gmra.mrb[38].mxu1 %vm129_vm0, %v3985_v23 }
0x1bdc   :  { %v4809_v24 = vpop.f32.mrb[38].mxu1 }
0x1bdd   :  { %v4077_v25 = vadd.f32 %v4809_v24, %v4402_v19  ;;  %v4071_v26 = vpop.f32.mrb[39].mxu1 }
0x1bde   :  { %v4072_v27 = vadd.f32 %v4402_v19, %v4071_v26 }
0x1bdf   :  { %v4087_v28 = vsel %vm129_vm0, %v4077_v25, 0.0 }
0x1be0   :  { %4088 = vadd.xlane.f32.xlu0 %v4087_v28  ;;  %v4084_v29 = vsel %vm129_vm0, %v4072_v27, 0.0 }
0x1be1   :  { %4085 = vadd.xlane.f32.xlu1 %v4084_v29 }
0x1c6d   :  { %v4089_v30 = vpop.xlane.xlu0 %4088 }
0x1c6e   :  { %v4091_v31 = vmul.f32 0.03125, %v4089_v30  ;;  %v4086_v32 = vpop.xlane.xlu1 %4085 }
0x1c6f   :  { %v4090_v33 = vmul.f32 0.03125, %v4086_v32 }
0x1c70   :  { %v4093_v34 = vsub.f32 %v4077_v25, %v4091_v31 }
0x1c71   :  { %v4092_v35 = vsub.f32 %v4072_v27, %v4090_v33 }
0x1c72   :  { %v4095_v36 = vmul.f32 %v4093_v34, %v4093_v34 }
0x1c73   :  { %v4094_v37 = vmul.f32 %v4092_v35, %v4092_v35 }
0x1c74   :  { %v4099_v38 = vsel %vm129_vm0, %v4095_v36, 0.0 }
0x1c75   :  { %4100 = vadd.xlane.f32.xlu1 %v4099_v38  ;;  %v4096_v39 = vsel %vm129_vm0, %v4094_v37, 0.0 }
0x1c76   :  { %4097 = vadd.xlane.f32.xlu0 %v4096_v39  ;;  %v4409_v39 = vld [vmem:[%s5765_s10] ss:$0 sm:$0xff]  ;;  %s5182_s10 = smov [#allocation11]  }
0x1c77   :  { %s4300_s29 = sshll.u32 %s5182_s10, 4  ;;  %s4301_s29 = int_to_ptr.vmem [resolvable:$true] %s4300_s29 }
0x1c78   :  { %p5137_p13 = scmp.lt.s32.totalorder %s4301_s29, %s4301_s29 }
0x1d02   :  { %v4101_v40 = vpop.xlane.xlu1 %4100 }
0x1d03   :  { %v4103_v41 = vmul.f32 0.032258064, %v4101_v40  ;;  %v4098_v42 = vpop.xlane.xlu0 %4097 }
0x1d04   :  { %v4102_v43 = vmul.f32 0.032258064, %v4098_v42 }
0x1d05   :  { %5006 = vrsqrt.f32 %v4103_v41  ;;  %vm4113_vm7 = vcmp.eq.f32.partialorder %v4103_v41, inf  ;;  %v4116_v13 = vand.u32 2147483648, %v4103_v41  ;;  %vm4115_vm8 = vcmp.eq.f32.partialorder %v4103_v41, 0.0 }
0x1d06   :  { %5008 = vrsqrt.f32 %v4102_v43  ;;  %vm4106_vm9 = vcmp.eq.f32.partialorder %v4102_v43, inf  ;;  %v4109_v7 = vand.u32 2147483648, %v4102_v43  ;;  %vm4108_vm10 = vcmp.eq.f32.partialorder %v4102_v43, 0.0 }
0x1d0f   :  { %v5007_v44 = vpop.eup %5006 }
0x1d10   :  { %v5009_v45 = vpop.eup %5008  ;;  %v4112_v46 = vmul.f32 %v5007_v44, %v4103_v41 }
0x1d11   :  { %v4105_v5 = vmul.f32 %v5009_v45, %v4102_v43 }
0x1d12   :  { %v4114_v48 = vsel %vm4113_vm7, %v4103_v41, %v4112_v46 }
0x1d13   :  { %v4107_v51 = vsel %vm4106_vm9, %v4102_v43, %v4105_v5  ;;  %v4117_v52 = vsel %vm4115_vm8, %v4116_v13, %v4114_v48  ;;  %v4410_v43 = vld [vmem:[%s5766_s11] ss:$0 sm:$0xff]  ;;  %s5132_s11 = scalar_lea.vmem %s4301_s29, 256 }
0x1d14   :  { %v4119_v50 = vadd.f32 1e-06, %v4117_v52  ;;  %v4110_v53 = vsel %vm4108_vm10, %v4109_v7, %v4107_v51  ;;  %v4411_v5 = vld [vmem:[%s5768_s13] ss:$0 sm:$0xff]  ;;  %p5133_p12 = scmp.ne.s32.totalorder %s4301_s29, %s5132_s11  ;;  %p5138_p0 = scmp.lt.s32.totalorder %s5132_s11, %s5132_s11 }
0x1d15   :  { %v4118_v54 = vadd.f32 1e-06, %v4110_v53 }
0x1d16   :  { %5010 = vrcp.f32 %v4119_v50  ;;  %p5139_p1 = por %p5138_p0, %p5137_p13 }
0x1d17   :  { %5012 = vrcp.f32 %v4118_v54 }
0x1d18   :  { %p5140_p2 = pnand %p5139_p1, %p5133_p12 }
0x1d20   :  { %v5011_v55 = vpop.eup %5010 }
0x1d21   :  { %v5013_v57 = vpop.eup %5012  ;;  %v4123_v58 = vmul.f32 %v5011_v55, %v4093_v34 }
0x1d22   :  { %v4122_v60 = vmul.f32 %v5013_v57, %v4092_v35 }
0x1d23   :  { %v4131_v49 = vmul.f32 %v4407_v56, %v4123_v58 }
0x1d24   :  { %v4130_v61 = vmul.f32 %v4407_v56, %v4122_v60 }
0x1d25   :  { %v4139_v62 = vadd.f32 %v4408_v59, %v4131_v49 }
0x1d26   :  { %v4138_v63 = vadd.f32 %v4408_v59, %v4130_v61 }
0x1d27   :  { %v4141_v0 = vadd.f32 %v4139_v62, %v5538_v47 }
0x1d28   :  { %v4140_v1 = vadd.f32 %v4138_v63, %v5531_v18  ;;  %v4200_v18 = vld [vmem:[%s5767_s12] sm:$0xff] }
0x1d29   :  { %v4147_v2 = vsel %vm129_vm0, %v4141_v0, 0.0  ;;  %v4869_v20 = vpack.c.bf16 %v4201_v16, %v4200_v18 }
0x1d2a   :  { %4148 = vadd.xlane.f32.xlu1 %v4147_v2  ;;  %v4144_v3 = vsel %vm129_vm0, %v4140_v1, 0.0 }
0x1d2b   :  { %4145 = vadd.xlane.f32.xlu0 %v4144_v3  ;;  %4870 = vmatprep.subr.bf16.mxu0 %v4869_v20 }
0x1d2c   :  { %4872 = vmatpush3.bf16.msra.mxu0 %v4869_v20 }
0x1d2d   :  { %4874 = vmatprep.subr.bf16.mxu0 %v4873_v22 }
0x1d30   :  { %4876 = vmatpush3.bf16.msra.mxu0 %v4873_v22 }
0x1db7   :  { %v4149_v4 = vpop.xlane.xlu1 %4148 }
0x1db8   :  { %v4151_v6 = vmul.f32 0.03125, %v4149_v4  ;;  %v4146_v8 = vpop.xlane.xlu0 %4145 }
0x1db9   :  { %v4150_v9 = vmul.f32 0.03125, %v4146_v8 }
0x1dba   :  { %v4153_v10 = vsub.f32 %v4141_v0, %v4151_v6 }
0x1dbb   :  { %v4152_v11 = vsub.f32 %v4140_v1, %v4150_v9 }
0x1dbc   :  { %v4155_v12 = vmul.f32 %v4153_v10, %v4153_v10 }
0x1dbd   :  { %v4154_v14 = vmul.f32 %v4152_v11, %v4152_v11 }
0x1dbe   :  { %v4159_v15 = vsel %vm129_vm0, %v4155_v12, 0.0 }
0x1dbf   :  { %4160 = vadd.xlane.f32.xlu1 %v4159_v15  ;;  %v4156_v47 = vsel %vm129_vm0, %v4154_v14, 0.0 }
0x1dc0   :  { %4157 = vadd.xlane.f32.xlu0 %v4156_v47 }
0x1e4c   :  { %v4161_v23 = vpop.xlane.xlu1 %4160 }
0x1e4d   :  { %v4163_v19 = vmul.f32 0.032258064, %v4161_v23  ;;  %v4158_v24 = vpop.xlane.xlu0 %4157 }
0x1e4e   :  { %v4162_v25 = vmul.f32 0.032258064, %v4158_v24 }
0x1e4f   :  { %5014 = vrsqrt.f32 %v4163_v19  ;;  %vm4173_vm11 = vcmp.eq.f32.partialorder %v4163_v19, inf  ;;  %v4176_v29 = vand.u32 2147483648, %v4163_v19  ;;  %vm4175_vm12 = vcmp.eq.f32.partialorder %v4163_v19, 0.0 }
0x1e50   :  { %5016 = vrsqrt.f32 %v4162_v25  ;;  %vm4166_vm13 = vcmp.eq.f32.partialorder %v4162_v25, inf  ;;  %v4169_v32 = vand.u32 2147483648, %v4162_v25  ;;  %vm4168_vm14 = vcmp.eq.f32.partialorder %v4162_v25, 0.0 }
0x1e59   :  { %v5015_v26 = vpop.eup %5014 }
0x1e5a   :  { %v5017_v27 = vpop.eup %5016  ;;  %v4172_v28 = vmul.f32 %v5015_v26, %v4163_v19 }
0x1e5b   :  { %v4165_v30 = vmul.f32 %v5017_v27, %v4162_v25 }
0x1e5c   :  { %v4174_v31 = vsel %vm4173_vm11, %v4163_v19, %v4172_v28 }
0x1e5d   :  { %v4177_v33 = vsel %vm4175_vm12, %v4176_v29, %v4174_v31  ;;  %v4167_v34 = vsel %vm4166_vm13, %v4162_v25, %v4165_v30 }
0x1e5e   :  { %v4179_v35 = vadd.f32 1e-06, %v4177_v33  ;;  %v4170_v36 = vsel %vm4168_vm14, %v4169_v32, %v4167_v34 }
0x1e5f   :  { %v4178_v37 = vadd.f32 1e-06, %v4170_v36 }
0x1e60   :  { %5018 = vrcp.f32 %v4179_v35 }
0x1e61   :  { %5020 = vrcp.f32 %v4178_v37 }
0x1e6a   :  { %v5019_v38 = vpop.eup %5018 }
0x1e6b   :  { %v5021_v40 = vpop.eup %5020  ;;  %v4183_v41 = vmul.f32 %v5019_v38, %v4153_v10 }
0x1e6c   :  { %v4182_v42 = vmul.f32 %v5021_v40, %v4152_v11 }
0x1e6d   :  { %v4191_v44 = vmul.f32 %v4409_v39, %v4183_v41 }
0x1e6e   :  { %v4190_v45 = vmul.f32 %v4409_v39, %v4182_v42 }
0x1e6f   :  { %v4199_v13 = vadd.f32 %v4410_v43, %v4191_v44 }
0x1e70   :  { %v4198_v46 = vadd.f32 %v4410_v43, %v4190_v45 }
0x1e72   :  { %4818 = vmatprep.mubr.msk.f32.mxu0 %vm129_vm0, %v4198_v46 }
0x1e73   :  { %4819 = vmatmul.mubr.msk.f32.vlgmr.msra.gmra.mrb[36].mxu0 %vm129_vm0, %v4199_v13 }
0x1f46   :  { %v4820_v48 = vpop.f32.mrb[36].mxu0 }
0x1f47   :  { %v4289_v7 = vadd.f32 %v4820_v48, %v4411_v5  ;;  %v4283_v51 = vpop.f32.mrb[37].mxu0 }
0x1f48   :  { %v4284_v52 = vadd.f32 %v4411_v5, %v4283_v51 }
0x1f49   :  { %4294 = vst.msk [vmem:[#allocation11 + $0x8] sm:$0xff] %vm4292_vm15, %v4289_v7 }
0x1f4a   :  { %4293 = vst.msk [vmem:[#allocation11] sm:$0xff] %vm4292_vm15, %v4284_v52 }
0x1f4b   :  { %5143 = shalt.err (!%p5140_p2)
}
0x1f4c   :  { %s5144_s13 = scalar_lea.hbm %s5769_s14, 256 }
0x1f4d   :  { %p5145_p3 = scmp.ne.s32.totalorder %s5769_s14, %s5144_s13  ;;  %p5148_p4 = scmp.lt.u32.totalorder %s5144_s13, %s5769_s14 }
0x1f4f   :  { %p5150_p5 = pnand %p5148_p4, %p5145_p3 }
0x1f51   :  { %5153 = shalt.err (!%p5150_p5)
}
0x1f52   :  { %4306 = dma.vmem_to_hbm [thread:$0]  %s4301_s29, 256, %s5769_s14, [#allocation4], %s5164_s25, %s5164_s25, %s5165_s26  }
0x1f53   :  { %5160 = dma.done.wait [#allocation4], 256  }
0x1f54   :  { %5161 = vsyncadd [#allocation4], 4294967040 }
0x1f55   :  { %4310 = vsyncpa [#allocation3], 1 }
0x1f56   :  { %4311 = vsyncpa [#allocation6], 1 }
0x1f57   :  { %4312 = vsyncpa [#allocation9], 1 }
0x1f58   :  { %4313 = vsyncpa [#allocation4], 1 }

</bundles_post_ra>
